<compile_context>
chip_gen: v7x
topology: tpu7x:2x2x1
jax: 0.10.0
libtpu: 0.0.40
codegen_flags: <defaults>
</compile_context>

<pallas_src>
import functools

import jax
import jax.numpy as jnp
import numpy as np
from jax.experimental import pallas as pl
from jax.experimental.pallas import tpu as pltpu


def _leaky_relu(x, slope=0.01):
    # max(x, slope*x) == where(x>=0, x, slope*x) for 0 < slope < 1.
    return jnp.maximum(x, slope * x)


def _round_up(x, m):
    return ((x + m - 1) // m) * m


# ---------------------------------------------------------------------------
# Kernel
# ---------------------------------------------------------------------------
def _lstm_hetero_gnn_kernel(x_ref, h0_ref, c0_ref, w_ref, b_ref, out_ref):
    # Static layout, derived from the block shapes.
    fin = x_ref.shape[-1]              # raw mesh-node feature width
    L = h0_ref.shape[-1]               # latent dimension
    r_ih = _round_up(fin, 8)           # row offsets into the packed weight slab
    r_hh = r_ih + L
    r_d1 = r_hh + L
    r_d2 = r_d1 + L
    wdt = w_ref.dtype

    x = x_ref[...]                     # (TN, fin)
    h0 = h0_ref[...]                   # (TN, L)
    c0 = c0_ref[...].astype(jnp.float32)

    # ---- GNN-base node encoder (stand-in) ---------------------------------
    enc = jnp.dot(x, w_ref[0:fin, 0:L], preferred_element_type=jnp.float32)
    enc = _leaky_relu(enc + b_ref[0:1, 0:L].astype(jnp.float32))     # (TN, L)

    # ---- single-step LSTM gates -------------------------------------------
    # Two accumulated dots (no lane concat of [enc|h0]); merged b_ih+b_hh.
    # PyTorch column order (i, f, g, o); the g columns were pre-scaled by 2
    # in pack_params so tanh(g) = 2*sigmoid(2g) - 1 (sigmoid-only EUP pass).
    gates = (
        jnp.dot(enc.astype(wdt), w_ref[r_ih:r_hh, :],
                preferred_element_type=jnp.float32)
        + jnp.dot(h0, w_ref[r_hh:r_d1, :],
                  preferred_element_type=jnp.float32)
        + b_ref[1:2, :].astype(jnp.float32)
    )                                                                 # (TN, 4L)

    sig = jax.nn.sigmoid(gates)                  # one full-width EUP pass
    i_g = sig[:, 0 * L:1 * L]
    f_g = sig[:, 1 * L:2 * L]
    g_t = 2.0 * sig[:, 2 * L:3 * L] - 1.0        # == tanh(g)
    o_g = sig[:, 3 * L:4 * L]

    c_n = f_g * c0 + i_g * g_t
    h_n = o_g * jnp.tanh(c_n)

    # ---- MLP decoder -------------------------------------------------------
    d1 = jnp.dot(h_n.astype(wdt), w_ref[r_d1:r_d2, 0:L],
                 preferred_element_type=jnp.float32)
    d1 = _leaky_relu(d1 + b_ref[2:3, 0:L].astype(jnp.float32))        # (TN, L)
    # W_d2 / b_d2 live in lanes [2L : 2L+out] of their slab rows (all other
    # lanes are exactly zero), so y lands at its packed-output lane offset.
    y_full = jnp.dot(d1.astype(wdt), w_ref[r_d2:r_d2 + L, :],
                     preferred_element_type=jnp.float32) \
             + b_ref[3:4, :].astype(jnp.float32)                      # (TN, 4L)

    # ---- single lane-dense packed store: [h_n | c_n | y | 0] ---------------
    out_ref[...] = jnp.concatenate([h_n, c_n, y_full[:, 2 * L:]], axis=-1)


# ---------------------------------------------------------------------------
# Parameter packing (done once, outside the hot path)
# ---------------------------------------------------------------------------
def pack_params(params, dtype=jnp.float32):
    """Packs all weights into one (rows, 4L) slab and all biases into (8, 4L).

    b_ih + b_hh is folded into a single gate bias and the g-gate columns of
    W_ih / W_hh / bias are pre-scaled by 2 (kernel uses tanh(g)=2*sigmoid(2g)-1).
    Columns outside each block's valid lanes are exactly zero (the packed-y
    lanes rely on this).
    """
    w_enc = jnp.asarray(params["w_enc"], jnp.float32)
    fin, L = w_enc.shape
    out_f = params["w_d2"].shape[1]
    width = 4 * L
    assert width % 128 == 0, "latent_dimension must be a multiple of 32"
    assert out_f <= 2 * L, "out_node_features must fit in the packed output"

    r_ih = _round_up(fin, 8)
    r_hh = r_ih + L
    r_d1 = r_hh + L
    r_d2 = r_d1 + L
    rows = r_d2 + L                                              # multiple of 8

    def scale_g(m):  # pre-scale g-gate columns (2L:3L) by 2
        return m.at[..., 2 * L:3 * L].multiply(2.0)

    w_ih = scale_g(jnp.asarray(params["w_ih"], jnp.float32))
    w_hh = scale_g(jnp.asarray(params["w_hh"], jnp.float32))
    b_gate = scale_g(jnp.asarray(params["b_ih"], jnp.float32)
                     + jnp.asarray(params["b_hh"], jnp.float32)).reshape(width)

    w_slab = jnp.zeros((rows, width), jnp.float32)
    w_slab = w_slab.at[0:fin, 0:L].set(w_enc)
    w_slab = w_slab.at[r_ih:r_hh, :].set(w_ih)
    w_slab = w_slab.at[r_hh:r_d1, :].set(w_hh)
    w_slab = w_slab.at[r_d1:r_d2, 0:L].set(jnp.asarray(params["w_d1"], jnp.float32))
    w_slab = w_slab.at[r_d2:rows, 2 * L:2 * L + out_f].set(
        jnp.asarray(params["w_d2"], jnp.float32))

    b_slab = jnp.zeros((8, width), jnp.float32)
    b_slab = b_slab.at[0, 0:L].set(jnp.asarray(params["b_enc"], jnp.float32).reshape(L))
    b_slab = b_slab.at[1, :].set(b_gate)
    b_slab = b_slab.at[2, 0:L].set(jnp.asarray(params["b_d1"], jnp.float32).reshape(L))
    b_slab = b_slab.at[3, 2 * L:2 * L + out_f].set(
        jnp.asarray(params["b_d2"], jnp.float32).reshape(out_f))
    return w_slab.astype(dtype), b_slab.astype(dtype)


# ---------------------------------------------------------------------------
# Wrapper
# ---------------------------------------------------------------------------
def lstm_hetero_gnn_forward(x_nodes, h0, c0, w_slab, b_slab, *,
                            out_features, tile_n=1024):
    """x_nodes: (N, Fin); h0/c0: (1, N, L) (PyTorch LSTM state layout) or None.

    tile_n caps the per-step node tile; the grid is cdiv(N, tile_n) steps so
    DMA overlaps compute and (on v7x) both TensorCores receive multiple steps.
    """
    N, fin = x_nodes.shape
    width = w_slab.shape[-1]
    L = width // 4
    dtype = w_slab.dtype

    if h0 is None:
        h0 = jnp.zeros((1, N, L), jnp.float32)
    if c0 is None:
        c0 = jnp.zeros((1, N, L), jnp.float32)

    # No hot-path padding: native feature width, ragged last node tile is
    # handled by Pallas partial blocks (padded output rows are dropped).
    x_in = x_nodes if x_nodes.dtype == dtype else x_nodes.astype(dtype)
    h0_2d = h0.reshape(-1, L)
    c0_2d = c0.reshape(-1, L)
    if h0_2d.dtype != dtype:
        h0_2d = h0_2d.astype(dtype)
    if c0_2d.dtype != dtype:
        c0_2d = c0_2d.astype(dtype)

    tile_n = max(8, min(_round_up(int(tile_n), 8), _round_up(N, 8)))
    grid = (pl.cdiv(N, tile_n),)

    node_spec = lambda d: pl.BlockSpec((tile_n, d), lambda i: (i, 0))
    const_spec = lambda shape: pl.BlockSpec(shape, lambda i: (0, 0))

    grid_spec = pltpu.PrefetchScalarGridSpec(
        num_scalar_prefetch=0,
        grid=grid,
        in_specs=[
            node_spec(fin),              # x (native width)
            node_spec(L),                # h0
            node_spec(L),                # c0
            const_spec(w_slab.shape),    # packed weights (constant block)
            const_spec(b_slab.shape),    # packed biases  (constant block)
        ],
        out_specs=pl.BlockSpec((tile_n, width), lambda i: (i, 0)),
    )

    packed_out = pl.pallas_call(
        _lstm_hetero_gnn_kernel,
        grid_spec=grid_spec,
        out_shape=jax.ShapeDtypeStruct((N, width), jnp.float32),
        compiler_params=pltpu.CompilerParams(
            dimension_semantics=("parallel",),
            vmem_limit_bytes=32 * 1024 * 1024,
        ),
    )(x_in, h0_2d, c0_2d, w_slab, b_slab)

    h_n = packed_out[:, 0:L]
    c_n = packed_out[:, L:2 * L]
    y = packed_out[:, 2 * L:2 * L + out_features]

    # Match PyTorch shapes: decoder output (N, 1, out), lstm state (1, N, L).
    return y.reshape(N, 1, out_features), h_n.reshape(1, N, L), c_n.reshape(1, N, L)


# ---------------------------------------------------------------------------
# Pure-JAX reference (PyTorch semantics, unpacked params)
# ---------------------------------------------------------------------------
def _reference(x_nodes, h0, c0, p):
    L = p["w_hh"].shape[0]
    enc = jnp.where(x_nodes @ p["w_enc"] + p["b_enc"] >= 0,
                    x_nodes @ p["w_enc"] + p["b_enc"],
                    0.01 * (x_nodes @ p["w_enc"] + p["b_enc"]))
    h0_ = h0.reshape(-1, L)
    c0_ = c0.reshape(-1, L)
    gates = enc @ p["w_ih"] + p["b_ih"] + h0_ @ p["w_hh"] + p["b_hh"]
    i_g = jax.nn.sigmoid(gates[:, 0 * L:1 * L])
    f_g = jax.nn.sigmoid(gates[:, 1 * L:2 * L])
    g_g = jnp.tanh(gates[:, 2 * L:3 * L])
    o_g = jax.nn.sigmoid(gates[:, 3 * L:4 * L])
    c_n = f_g * c0_ + i_g * g_g
    h_n = o_g * jnp.tanh(c_n)
    d1 = h_n @ p["w_d1"] + p["b_d1"]
    d1 = jnp.where(d1 >= 0, d1, 0.01 * d1)
    y = d1 @ p["w_d2"] + p["b_d2"]
    return y[:, None, :], h_n[None], c_n[None]


if __name__ == "__main__":
    N = 1000         # number of mesh nodes (LSTM "batch"); ragged vs tile_n=256
    FIN = 12         # raw mesh-node feature dim
    L = 32           # latent_dimension
    OUT = 3          # out_node_features

    key = jax.random.PRNGKey(0)
    keys = jax.random.split(key, 16)
    s = 0.1
    params = {
        "w_enc": s * jax.random.normal(keys[0], (FIN, L), jnp.float32),
        "b_enc": s * jax.random.normal(keys[1], (1, L), jnp.float32),
        "w_ih": s * jax.random.normal(keys[2], (L, 4 * L), jnp.float32),
        "b_ih": s * jax.random.normal(keys[3], (1, 4 * L), jnp.float32),
        "w_hh": s * jax.random.normal(keys[4], (L, 4 * L), jnp.float32),
        "b_hh": s * jax.random.normal(keys[5], (1, 4 * L), jnp.float32),
        "w_d1": s * jax.random.normal(keys[6], (L, L), jnp.float32),
        "b_d1": s * jax.random.normal(keys[7], (1, L), jnp.float32),
        "w_d2": s * jax.random.normal(keys[8], (L, OUT), jnp.float32),
        "b_d2": s * jax.random.normal(keys[9], (1, OUT), jnp.float32),
    }
    x_nodes = jax.random.normal(keys[10], (N, FIN), jnp.float32)
    h0 = jax.random.normal(keys[11], (1, N, L), jnp.float32)
    c0 = jax.random.normal(keys[12], (1, N, L), jnp.float32)

    y_ref, h_ref, c_ref = _reference(x_nodes, h0, c0, params)

    # ---- float32 path (tight tolerance) -----------------------------------
    w_slab, b_slab = pack_params(params)                 # gate scale + bias fold
    w_slab, b_slab = jax.block_until_ready((w_slab, b_slab))

    fwd = jax.jit(functools.partial(
        lstm_hetero_gnn_forward, out_features=OUT, tile_n=256))   # 4 grid steps

    y, h_n, c_n = fwd(x_nodes, h0, c0, w_slab, b_slab)
    jax.block_until_ready((y, h_n, c_n))

    np.testing.assert_allclose(np.asarray(y), np.asarray(y_ref), atol=2e-4, rtol=2e-4)
    np.testing.assert_allclose(np.asarray(h_n), np.asarray(h_ref), atol=2e-4, rtol=2e-4)
    np.testing.assert_allclose(np.asarray(c_n), np.asarray(c_ref), atol=2e-4, rtol=2e-4)

    # ---- bf16 input/weight path (HBM-bound -> ~half the input bytes) ------
    w_bf, b_bf = pack_params(params, dtype=jnp.bfloat16)
    y2, h2, c2 = fwd(x_nodes, h0, c0, w_bf, b_bf)
    jax.block_until_ready((y2, h2, c2))

    np.testing.assert_allclose(np.asarray(y2), np.asarray(y_ref), atol=5e-2, rtol=5e-2)
    np.testing.assert_allclose(np.asarray(h2), np.asarray(h_ref), atol=5e-2, rtol=5e-2)
    np.testing.assert_allclose(np.asarray(c2), np.asarray(c_ref), atol=5e-2, rtol=5e-2)

    print("KERNEL_OK")
</pallas_src>

<mosaic_0001>
module attributes {stable_mosaic.version = 11 : i64} {
  func.func @_lstm_hetero_gnn_kernel(%arg0: i32, %arg1: memref<256x12xf32, #tpu.memory_space<vmem>>, %arg2: memref<256x32xf32, #tpu.memory_space<vmem>>, %arg3: memref<256x32xf32, #tpu.memory_space<vmem>>, %arg4: memref<144x128xf32, #tpu.memory_space<vmem>>, %arg5: memref<8x128xf32, #tpu.memory_space<vmem>>, %arg6: memref<256x128xf32, #tpu.memory_space<vmem>>) attributes {dimension_semantics = [#tpu.dimension_semantics<parallel>], iteration_bounds = array<i64: 4>, scalar_prefetch = 0 : i64, scratch_operands = 0 : i64, tpu.core_type = #tpu.core_type<tc>, window_params = [{transform_indices = @transform_0, window_bounds = array<i64: 256, 12>}, {transform_indices = @transform_1, window_bounds = array<i64: 256, 32>}, {transform_indices = @transform_2, window_bounds = array<i64: 256, 32>}, {pipeline_mode = #tpu.pipeline_mode<synchronous>, transform_indices = @transform_3, window_bounds = array<i64: 144, 128>}, {pipeline_mode = #tpu.pipeline_mode<synchronous>, transform_indices = @transform_4, window_bounds = array<i64: 8, 128>}, {transform_indices = @transform_5, window_bounds = array<i64: 256, 128>}]} {
    %c0 = arith.constant 0 : index
    %c0_0 = arith.constant 0 : index
    %0 = vector.load %arg1[%c0, %c0_0] : memref<256x12xf32, #tpu.memory_space<vmem>>, vector<256x12xf32>
    %c0_1 = arith.constant 0 : index
    %c0_2 = arith.constant 0 : index
    %1 = vector.load %arg2[%c0_1, %c0_2] : memref<256x32xf32, #tpu.memory_space<vmem>>, vector<256x32xf32>
    %c0_3 = arith.constant 0 : index
    %c0_4 = arith.constant 0 : index
    %2 = vector.load %arg3[%c0_3, %c0_4] : memref<256x32xf32, #tpu.memory_space<vmem>>, vector<256x32xf32>
    %c0_5 = arith.constant 0 : index
    %c0_6 = arith.constant 0 : index
    %3 = vector.load %arg4[%c0_5, %c0_6] : memref<144x128xf32, #tpu.memory_space<vmem>>, vector<12x32xf32>
    %cst = arith.constant dense<0.000000e+00> : vector<256x32xf32>
    %4 = tpu.matmul %0, %3, %cst {dimension_numbers = #tpu.dot_dimension_numbers<[1], [0], [0], [1], [0, 0, 1, 1], [], []>} : vector<256x12xf32>, vector<12x32xf32>, vector<256x32xf32> -> vector<256x32xf32>
    %c0_7 = arith.constant 0 : index
    %c0_8 = arith.constant 0 : index
    %5 = vector.load %arg5[%c0_7, %c0_8] : memref<8x128xf32, #tpu.memory_space<vmem>>, vector<1x32xf32>
    %6 = vector.broadcast %5 : vector<1x32xf32> to vector<256x32xf32>
    %7 = arith.addf %4, %6 : vector<256x32xf32>
    %cst_9 = arith.constant 0.00999999977 : f32
    %8 = vector.broadcast %cst_9 : f32 to vector<256x32xf32>
    %9 = arith.mulf %8, %7 : vector<256x32xf32>
    %10 = arith.maximumf %7, %9 : vector<256x32xf32>
    %c16 = arith.constant 16 : index
    %c0_10 = arith.constant 0 : index
    %11 = vector.load %arg4[%c16, %c0_10] : memref<144x128xf32, #tpu.memory_space<vmem>>, vector<32x128xf32>
    %cst_11 = arith.constant dense<0.000000e+00> : vector<256x128xf32>
    %12 = tpu.matmul %10, %11, %cst_11 {dimension_numbers = #tpu.dot_dimension_numbers<[1], [0], [0], [1], [0, 0, 1, 1], [], []>} : vector<256x32xf32>, vector<32x128xf32>, vector<256x128xf32> -> vector<256x128xf32>
    %c48 = arith.constant 48 : index
    %c0_12 = arith.constant 0 : index
    %13 = vector.load %arg4[%c48, %c0_12] : memref<144x128xf32, #tpu.memory_space<vmem>>, vector<32x128xf32>
    %cst_13 = arith.constant dense<0.000000e+00> : vector<256x128xf32>
    %14 = tpu.matmul %1, %13, %cst_13 {dimension_numbers = #tpu.dot_dimension_numbers<[1], [0], [0], [1], [0, 0, 1, 1], [], []>} : vector<256x32xf32>, vector<32x128xf32>, vector<256x128xf32> -> vector<256x128xf32>
    %15 = arith.addf %12, %14 : vector<256x128xf32>
    %c1 = arith.constant 1 : index
    %c0_14 = arith.constant 0 : index
    %16 = vector.load %arg5[%c1, %c0_14] : memref<8x128xf32, #tpu.memory_space<vmem>>, vector<1x128xf32>
    %17 = vector.broadcast %16 : vector<1x128xf32> to vector<256x128xf32>
    %18 = arith.addf %15, %17 : vector<256x128xf32>
    %19 = arith.negf %18 : vector<256x128xf32>
    %20 = math.exp %19 : vector<256x128xf32>
    %cst_15 = arith.constant 1.000000e+00 : f32
    %21 = vector.broadcast %cst_15 : f32 to vector<256x128xf32>
    %22 = arith.addf %21, %20 : vector<256x128xf32>
    %23 = arith.divf %21, %22 : vector<256x128xf32>
    %24 = vector.extract_strided_slice %23 {offsets = [0, 0], sizes = [256, 32], strides = [1, 1]} : vector<256x128xf32> to vector<256x32xf32>
    %25 = vector.extract_strided_slice %23 {offsets = [0, 32], sizes = [256, 32], strides = [1, 1]} : vector<256x128xf32> to vector<256x32xf32>
    %26 = vector.extract_strided_slice %23 {offsets = [0, 64], sizes = [256, 32], strides = [1, 1]} : vector<256x128xf32> to vector<256x32xf32>
    %cst_16 = arith.constant 2.000000e+00 : f32
    %27 = vector.broadcast %cst_16 : f32 to vector<256x32xf32>
    %28 = arith.mulf %27, %26 : vector<256x32xf32>
    %cst_17 = arith.constant 1.000000e+00 : f32
    %29 = vector.broadcast %cst_17 : f32 to vector<256x32xf32>
    %30 = arith.subf %28, %29 : vector<256x32xf32>
    %31 = vector.extract_strided_slice %23 {offsets = [0, 96], sizes = [256, 32], strides = [1, 1]} : vector<256x128xf32> to vector<256x32xf32>
    %32 = arith.mulf %25, %2 : vector<256x32xf32>
    %33 = arith.mulf %24, %30 : vector<256x32xf32>
    %34 = arith.addf %32, %33 : vector<256x32xf32>
    %35 = math.tanh %34 : vector<256x32xf32>
    %36 = arith.mulf %31, %35 : vector<256x32xf32>
    %c80 = arith.constant 80 : index
    %c0_18 = arith.constant 0 : index
    %37 = vector.load %arg4[%c80, %c0_18] : memref<144x128xf32, #tpu.memory_space<vmem>>, vector<32x32xf32>
    %cst_19 = arith.constant dense<0.000000e+00> : vector<256x32xf32>
    %38 = tpu.matmul %36, %37, %cst_19 {dimension_numbers = #tpu.dot_dimension_numbers<[1], [0], [0], [1], [0, 0, 1, 1], [], []>} : vector<256x32xf32>, vector<32x32xf32>, vector<256x32xf32> -> vector<256x32xf32>
    %c2 = arith.constant 2 : index
    %c0_20 = arith.constant 0 : index
    %39 = vector.load %arg5[%c2, %c0_20] : memref<8x128xf32, #tpu.memory_space<vmem>>, vector<1x32xf32>
    %40 = vector.broadcast %39 : vector<1x32xf32> to vector<256x32xf32>
    %41 = arith.addf %38, %40 : vector<256x32xf32>
    %cst_21 = arith.constant 0.00999999977 : f32
    %42 = vector.broadcast %cst_21 : f32 to vector<256x32xf32>
    %43 = arith.mulf %42, %41 : vector<256x32xf32>
    %44 = arith.maximumf %41, %43 : vector<256x32xf32>
    %c112 = arith.constant 112 : index
    %c0_22 = arith.constant 0 : index
    %45 = vector.load %arg4[%c112, %c0_22] : memref<144x128xf32, #tpu.memory_space<vmem>>, vector<32x128xf32>
    %cst_23 = arith.constant dense<0.000000e+00> : vector<256x128xf32>
    %46 = tpu.matmul %44, %45, %cst_23 {dimension_numbers = #tpu.dot_dimension_numbers<[1], [0], [0], [1], [0, 0, 1, 1], [], []>} : vector<256x32xf32>, vector<32x128xf32>, vector<256x128xf32> -> vector<256x128xf32>
    %c3 = arith.constant 3 : index
    %c0_24 = arith.constant 0 : index
    %47 = vector.load %arg5[%c3, %c0_24] : memref<8x128xf32, #tpu.memory_space<vmem>>, vector<1x128xf32>
    %48 = vector.broadcast %47 : vector<1x128xf32> to vector<256x128xf32>
    %49 = arith.addf %46, %48 : vector<256x128xf32>
    %50 = vector.extract_strided_slice %49 {offsets = [0, 64], sizes = [256, 64], strides = [1, 1]} : vector<256x128xf32> to vector<256x64xf32>
    %51 = tpu.concatenate %36, %34, %50 in 1 : vector<256x32xf32>, vector<256x32xf32>, vector<256x64xf32> -> vector<256x128xf32>
    %c0_25 = arith.constant 0 : index
    %c0_26 = arith.constant 0 : index
    %52 = vector.load %arg6[%c0_25, %c0_26] : memref<256x128xf32, #tpu.memory_space<vmem>>, vector<256x128xf32>
    tpu.vector_store %arg6[%c0_25, %c0_26], %51 {strides = array<i32>} : memref<256x128xf32, #tpu.memory_space<vmem>>, vector<256x128xf32>,
    return
  }
  func.func @transform_0(%arg0: i32) -> (i32, i32) {
    %c0_i32 = arith.constant 0 : i32
    %c0_i32_0 = arith.constant 0 : i32
    return %arg0, %c0_i32 : i32, i32
  }
  func.func @transform_1(%arg0: i32) -> (i32, i32) {
    %c0_i32 = arith.constant 0 : i32
    %c0_i32_0 = arith.constant 0 : i32
    return %arg0, %c0_i32 : i32, i32
  }
  func.func @transform_2(%arg0: i32) -> (i32, i32) {
    %c0_i32 = arith.constant 0 : i32
    %c0_i32_0 = arith.constant 0 : i32
    return %arg0, %c0_i32 : i32, i32
  }
  func.func @transform_3(%arg0: i32) -> (i32, i32) {
    %c0_i32 = arith.constant 0 : i32
    %c0_i32_0 = arith.constant 0 : i32
    %c0_i32_1 = arith.constant 0 : i32
    return %c0_i32, %c0_i32_0 : i32, i32
  }
  func.func @transform_4(%arg0: i32) -> (i32, i32) {
    %c0_i32 = arith.constant 0 : i32
    %c0_i32_0 = arith.constant 0 : i32
    %c0_i32_1 = arith.constant 0 : i32
    return %c0_i32, %c0_i32_0 : i32, i32
  }
  func.func @transform_5(%arg0: i32) -> (i32, i32) {
    %c0_i32 = arith.constant 0 : i32
    %c0_i32_0 = arith.constant 0 : i32
    return %arg0, %c0_i32 : i32, i32
  }
}

</mosaic_0001>

<bundles_post_ra>
// kernel: lstm_hetero_gnn_forward.1
= control target key start
LH: loop header
LB: loop body
LE: loop exit
PB: predicated region body
PF: predicated region fallthrough
CT: control target
= control target key end

     0   :  { %s4909_s18 = smov 0   ;;  %s4911_s19 = smov 0   ;;  %s6384_s0 = inlined_call_operand.vmem [shape: f32[1000,12], index: 0, kind: input, shape index: {}]   ;;  %s6385_s1 = inlined_call_operand.vmem [shape: f32[1000,32], index: 1, kind: input, shape index: {}]   ;;  %s6386_s2 = inlined_call_operand.vmem [shape: f32[1000,32], index: 2, kind: input, shape index: {}]   ;;  %s6387_s3 = inlined_call_operand.vmem [shape: f32[144,128], index: 3, kind: input, shape index: {}]   ;;  %s6388_s4 = inlined_call_operand.vmem [shape: f32[8,128], index: 4, kind: input, shape index: {}]   ;;  %s6389_s5 = inlined_call_operand.vmem [shape: f32[1000,128], index: 5, kind: output, shape index: {}]  }
   0x1   :  { %s4913_s20 = smov 0  }
   0x2 LB: > { %s4922_s21 = sadd.s32 4294967295, %s4842_s20   ;;  %s4924_s22 = sadd.s32 1, %s4842_s20   ;;  %s4842_s20 = sphi %s4913_s20, %s6480_s20   ;;  %s4838_s19 = sphi %s4911_s19, %s6479_s19   ;;  %s4834_s18 = sphi %s4909_s18, %s6478_s18  }
   0x3   : > { %s139_s23 = ssub.s32 %s4842_s20, %s4924_s22  ;;  %s142_s24 = sadd.s32 1, %s4838_s19 }
   0x4   : > { %p140_p0 = scmp.eq.s32.totalorder %s139_s23, 0  ;;  %p152_p1 = scmp.ne.s32.totalorder %s4838_s19, %s4834_s18 }
   0x5   : > { %p153_p2 = scmp.eq.s32.totalorder %s4922_s21, 3  ;;  %p3722_p3 = scmp.ge.s32.totalorder %s4842_s20, 1 }
   0x6   : > { %s4932_s25 = scalar_select %p140_p0, %s4838_s19, %s142_s24  }
   0x7   : > { %p4934_p4 = por %p153_p2, %p152_p1  ;;  %p234_p5 = scmp.lt.s32.totalorder %s4842_s20, 5 }
   0x9   : > { %p235_p6 = pnand %p3722_p3, %p234_p5 }
   0xb   : > { %238 = sbr.rel (%p235_p6) target bundleno = 1534 (0x5fe), region = 40 }
  0x12   : > { %v426_v0 = vld [vmem:[%s6387_s3] sm:$0xff]  ;;  %v427_v1 = vld [vmem:[%s6387_s3 + $0x8] sm:$0xf]  ;;  %vm530_vm0 = vcmask 1043456   ;;  %s4945_s6 = sshll.u32 %s4922_s21, 5  ;;  %vm4876_vm1 = vmmov 1  }
  0x13   : > { %v4433_v2 = vpack.c.bf16 %v427_v1, %v426_v0  ;;  %vm4434_vm2 = vmpackc.low %vm530_vm0, %vm4876_vm1  ;;  %p288_p7 = scmp.lt.s32.totalorder %s4945_s6, 124  ;;  %v827_v3 = vld [vmem:[%s6387_s3 + $0x30] sm:$0xff]  ;;  %v828_v4 = vld [vmem:[%s6387_s3 + $0x38] sm:$0xff]  ;;  %vm433_vm3 = vcmask 97280   ;;  %vm831_vm4 = vcmask 261120   ;;  %s4877_s17 = smov 32  }
  0x14   : > { %v4439_v5 = vpack.c.bf16 %v828_v4, %v827_v3  ;;  %v829_v9 = vld [vmem:[%s6387_s3 + $0x40] sm:$0xff]  ;;  %v830_v10 = vld [vmem:[%s6387_s3 + $0x48] sm:$0xff]  ;;  %v823_v17 = vld [vmem:[%s6387_s3 + $0x10] sm:$0xff]  ;;  %s4878_s27 = smov 64   ;;  %s280_s28 = sand.u32 1, %s4834_s18   ;;  %vm3291_vm5 = vcmask 523264  }
  0x15   : > { %4435 = vmatprep.subr.msk.bf16.mxu0 %vm4434_vm2, %v4433_v2  ;;  %s289_s11 = scalar_select %p288_p7, %s4945_s6, 124  ;;  %4471 = vmatprep.subr.msk.bf16.mxu1 %vm4434_vm2, %v4433_v2  ;;  %v4443_v15 = vpack.c.bf16 %v830_v10, %v829_v9  ;;  %v824_v18 = vld [vmem:[%s6387_s3 + $0x18] sm:$0xff]  ;;  %v825_v45 = vld [vmem:[%s6387_s3 + $0x20] sm:$0xff]  ;;  %v826_v46 = vld [vmem:[%s6387_s3 + $0x28] sm:$0xff] }
  0x16   : > { %4438 = vmatpush3.bf16.msk.msra.mxu0 %vm4434_vm2, %v4433_v2  ;;  %4472 = vmatpush3.bf16.msk.msra.mxu1 %vm4434_vm2, %v4433_v2  ;;  %v4447_v23 = vpack.c.bf16 %v824_v18, %v823_v17  ;;  %v4451_v49 = vpack.c.bf16 %v826_v46, %v825_v45  ;;  %v5182_v45 = vld [vmem:[%s6388_s4] ss:$0 sm:$0xff]  ;;  %s3723_s29 = sshll.u32 %s280_s28, 8  ;;  %s3976_s9 = sshll.u32 (%p4934_p4), %s4922_s21, 8 }
  0x17   : > { %s4955_s12 = sshll.u32 %s289_s11, 3  ;;  %4440 = vmatprep.subr.bf16.mxu1 %v4439_v5  ;;  %s6060_s18 = scalar_lea.vmem [#allocation2], %s3723_s29  }
  0x18   : > { %s4961_s15 = scalar_lea.vmem %s6384_s0, %s4955_s12  ;;  %s5039_s8 = scalar_lea.vmem %s6385_s1, %s4955_s12 }
  0x19   : > { %v330_v6 = vld [vmem:[%s4961_s15] sm:$0xff]  ;;  %v331_v7 = vld [vmem:[%s4961_s15 + $0x8] sm:$0xff]  ;;  %v332_v8 = vld [vmem:[%s4961_s15 + $0x10] sm:$0xff]  ;;  %s5119_s16 = scalar_lea.vmem %s6386_s2, %s4955_s12  ;;  %s6252_s13 = scalar_lea.vmem (%p4934_p4), %s6389_s5, %s3976_s9  }
  0x1a   : > { %4161 = vmatprep.mubr.msk.f32.mxu0 %vm433_vm3, %v330_v6  ;;  %v333_v11 = vld [vmem:[%s4961_s15 + $0x18] sm:$0xff]  ;;  %v334_v12 = vld [vmem:[%s4961_s15 + $0x20] sm:$0xff]  ;;  %v347_v14 = vld [vmem:[%s4961_s15 + $0x88] sm:$0xff] }
  0x1b   : > { %4162 = vmatmul.mubr.msk.f32.vlgmr.msra.gmra.mrb[0].mxu0 %vm433_vm3, %v331_v7  ;;  %v346_v13 = vld [vmem:[%s4961_s15 + $0x80] sm:$0xff]  ;;  %v348_v16 = vld [vmem:[%s4961_s15 + $0x90] sm:$0xff]  ;;  %v335_v19 = vld [vmem:[%s4961_s15 + $0x28] sm:$0xff] }
  0x1c   : > { %4164 = vmatprep.mubr.msk.f32.mxu0 %vm433_vm3, %v332_v8  ;;  %4185 = vmatprep.mubr.msk.f32.mxu1 %vm433_vm3, %v346_v13  ;;  %v336_v20 = vld [vmem:[%s4961_s15 + $0x30] sm:$0xff]  ;;  %v349_v21 = vld [vmem:[%s4961_s15 + $0x98] sm:$0xff]  ;;  %v350_v22 = vld [vmem:[%s4961_s15 + $0xa0] sm:$0xff] }
  0x1d   : > { %4186 = vmatmul.mubr.msk.f32.vlgmr.msra.gmra.mrb[0].mxu1 %vm433_vm3, %v347_v14  ;;  %v337_v24 = vld [vmem:[%s4961_s15 + $0x38] sm:$0xff]  ;;  %v338_v25 = vld [vmem:[%s4961_s15 + $0x40] sm:$0xff]  ;;  %v351_v26 = vld [vmem:[%s4961_s15 + $0xa8] sm:$0xff] }
  0x1e   : > { %4188 = vmatprep.mubr.msk.f32.mxu1 %vm433_vm3, %v348_v16  ;;  %4442 = vmatpush3.bf16.msra.mxu1 %v4439_v5  ;;  %v352_v27 = vld [vmem:[%s4961_s15 + $0xb0] sm:$0xff]  ;;  %v339_v28 = vld [vmem:[%s4961_s15 + $0x48] sm:$0xff]  ;;  %v353_v30 = vld [vmem:[%s4961_s15 + $0xb8] sm:$0xff] }
  0x1f   : > { %4165 = vmatmul.mubr.msk.f32.gmra.mrb[2].mxu0 %vm433_vm3, %v333_v11  ;;  %4444 = vmatprep.subr.bf16.mxu1 %v4443_v15  ;;  %v340_v29 = vld [vmem:[%s4961_s15 + $0x50] sm:$0xff]  ;;  %v354_v31 = vld [vmem:[%s4961_s15 + $0xc0] sm:$0xff]  ;;  %v341_v32 = vld [vmem:[%s4961_s15 + $0x58] sm:$0xff] }
  0x20   : > { %4167 = vmatprep.mubr.msk.f32.mxu0 %vm433_vm3, %v334_v12  ;;  %v342_v33 = vld [vmem:[%s4961_s15 + $0x60] sm:$0xff]  ;;  %v355_v34 = vld [vmem:[%s4961_s15 + $0xc8] sm:$0xff]  ;;  %v356_v35 = vld [vmem:[%s4961_s15 + $0xd0] sm:$0xff] }
  0x21   : > { %4189 = vmatmul.mubr.msk.f32.gmra.mrb[2].mxu1 %vm433_vm3, %v349_v21  ;;  %v343_v36 = vld [vmem:[%s4961_s15 + $0x68] sm:$0xff]  ;;  %v344_v37 = vld [vmem:[%s4961_s15 + $0x70] sm:$0xff]  ;;  %v357_v38 = vld [vmem:[%s4961_s15 + $0xd8] sm:$0xff] }
  0x22   : > { %4191 = vmatprep.mubr.msk.f32.mxu1 %vm433_vm3, %v350_v22  ;;  %4446 = vmatpush3.bf16.msra.mxu1 %v4443_v15  ;;  %v358_v39 = vld [vmem:[%s4961_s15 + $0xe0] sm:$0xff]  ;;  %v345_v40 = vld [vmem:[%s4961_s15 + $0x78] sm:$0xff]  ;;  %v359_v41 = vld [vmem:[%s4961_s15 + $0xe8] sm:$0xff] }
  0x23   : > { %4168 = vmatmul.mubr.msk.f32.gmra.mrb[4].mxu0 %vm433_vm3, %v335_v19  ;;  %4448 = vmatprep.subr.bf16.mxu1 %v4447_v23  ;;  %v360_v42 = vld [vmem:[%s4961_s15 + $0xf0] sm:$0xff]  ;;  %v361_v43 = vld [vmem:[%s4961_s15 + $0xf8] sm:$0xff]  ;;  %v362_v44 = vld [vmem:[%s5039_s8] sm:$0xff] }
  0x24   : > { %4170 = vmatprep.mubr.msk.f32.mxu0 %vm433_vm3, %v336_v20  ;;  %v363_v47 = vld [vmem:[%s5039_s8 + $0x8] sm:$0xff]  ;;  %v364_v48 = vld [vmem:[%s5039_s8 + $0x10] sm:$0xff]  ;;  %v365_v50 = vld [vmem:[%s5039_s8 + $0x18] sm:$0xff] }
  0x25   : > { %4192 = vmatmul.mubr.msk.f32.gmra.mrb[4].mxu1 %vm433_vm3, %v351_v26  ;;  %v366_v51 = vld [vmem:[%s5039_s8 + $0x20] sm:$0xff]  ;;  %v367_v52 = vld [vmem:[%s5039_s8 + $0x28] sm:$0xff]  ;;  %v368_v53 = vld [vmem:[%s5039_s8 + $0x30] sm:$0xff] }
  0x26   : > { %4194 = vmatprep.mubr.msk.f32.mxu1 %vm433_vm3, %v352_v27  ;;  %v369_v54 = vld [vmem:[%s5039_s8 + $0x38] sm:$0xff]  ;;  %v370_v55 = vld [vmem:[%s5039_s8 + $0x40] sm:$0xff]  ;;  %v371_v56 = vld [vmem:[%s5039_s8 + $0x48] sm:$0xff] }
  0x27   : > { %4171 = vmatmul.mubr.msk.f32.gmra.mrb[6].mxu0 %vm433_vm3, %v337_v24  ;;  %v372_v57 = vld [vmem:[%s5039_s8 + $0x50] sm:$0xff]  ;;  %v373_v58 = vld [vmem:[%s5039_s8 + $0x58] sm:$0xff]  ;;  %v374_v59 = vld [vmem:[%s5039_s8 + $0x60] sm:$0xff] }
  0x28   : > { %4173 = vmatprep.mubr.msk.f32.mxu0 %vm433_vm3, %v338_v25  ;;  %v375_v60 = vld [vmem:[%s5039_s8 + $0x68] sm:$0xff]  ;;  %v376_v61 = vld [vmem:[%s5039_s8 + $0x70] sm:$0xff]  ;;  %v377_v62 = vld [vmem:[%s5039_s8 + $0x78] sm:$0xff] }
  0x29   : > { %4195 = vmatmul.mubr.msk.f32.gmra.mrb[6].mxu1 %vm433_vm3, %v353_v30  ;;  %v378_v63 = vld [vmem:[%s5039_s8 + $0x80] sm:$0xff]  ;;  %v379_v0 = vld [vmem:[%s5039_s8 + $0x88] sm:$0xff]  ;;  %v380_v1 = vld [vmem:[%s5039_s8 + $0x90] sm:$0xff] }
  0x2a   : > { %4197 = vmatprep.mubr.msk.f32.mxu1 %vm433_vm3, %v354_v31  ;;  %v381_v2 = vld [vmem:[%s5039_s8 + $0x98] sm:$0xff]  ;;  %v382_v3 = vld [vmem:[%s5039_s8 + $0xa0] sm:$0xff]  ;;  %v383_v4 = vld [vmem:[%s5039_s8 + $0xa8] sm:$0xff] }
  0x2b   : > { %4174 = vmatmul.mubr.msk.f32.gmra.mrb[8].mxu0 %vm433_vm3, %v339_v28  ;;  %v384_v5 = vld [vmem:[%s5039_s8 + $0xb0] sm:$0xff]  ;;  %v385_v6 = vld [vmem:[%s5039_s8 + $0xb8] sm:$0xff]  ;;  %v386_v7 = vld [vmem:[%s5039_s8 + $0xc0] sm:$0xff] }
  0x2c   : > { %4176 = vmatprep.mubr.msk.f32.mxu0 %vm433_vm3, %v340_v29  ;;  %v387_v8 = vld [vmem:[%s5039_s8 + $0xc8] sm:$0xff]  ;;  %v388_v9 = vld [vmem:[%s5039_s8 + $0xd0] sm:$0xff]  ;;  %v389_v10 = vld [vmem:[%s5039_s8 + $0xd8] sm:$0xff] }
  0x2d   : > { %4198 = vmatmul.mubr.msk.f32.gmra.mrb[8].mxu1 %vm433_vm3, %v355_v34  ;;  %v390_v11 = vld [vmem:[%s5039_s8 + $0xe0] sm:$0xff]  ;;  %v391_v12 = vld [vmem:[%s5039_s8 + $0xe8] sm:$0xff]  ;;  %v392_v13 = vld [vmem:[%s5039_s8 + $0xf0] sm:$0xff] }
  0x2e   : > { %4200 = vmatprep.mubr.msk.f32.mxu1 %vm433_vm3, %v356_v35  ;;  %v393_v14 = vld [vmem:[%s5039_s8 + $0xf8] sm:$0xff]  ;;  %v395_v15 = vld [vmem:[%s5119_s16 + $0x8] sm:$0xff]  ;;  %v394_v16 = vld [vmem:[%s5119_s16] sm:$0xff]  ;;  %s3364_s8 = ssub.s32 (%p4934_p4), 125, %s4945_s6 }
  0x2f   : > { %4177 = vmatmul.mubr.msk.f32.gmra.mrb[10].mxu0 %vm433_vm3, %v341_v32  ;;  %1801 = vrot.lane.b32.xlu1 %v395_v15, %s4877_s17  ;;  %v397_v17 = vld [vmem:[%s5119_s16 + $0x18] sm:$0xff]  ;;  %v396_v18 = vld [vmem:[%s5119_s16 + $0x10] sm:$0xff]  ;;  %v399_v19 = vld [vmem:[%s5119_s16 + $0x28] sm:$0xff]  ;;  %p3365_p8 = scmp.lt.s32.totalorder (%p4934_p4), %s3364_s8, 32 }
  0x30   : > { %4179 = vmatprep.mubr.msk.f32.mxu0 %vm433_vm3, %v342_v33  ;;  %1799 = vrot.lane.b32.xlu0 %v394_v16, %s4877_s17  ;;  %v398_v20 = vld [vmem:[%s5119_s16 + $0x20] sm:$0xff]  ;;  %v401_v21 = vld [vmem:[%s5119_s16 + $0x38] sm:$0xff]  ;;  %v400_v22 = vld [vmem:[%s5119_s16 + $0x30] sm:$0xff] }
  0x31   : > { %4201 = vmatmul.mubr.msk.f32.gmra.mrb[10].mxu1 %vm433_vm3, %v357_v38  ;;  %v402_v24 = vld [vmem:[%s5119_s16 + $0x40] sm:$0xff]  ;;  %v405_v25 = vld [vmem:[%s5119_s16 + $0x58] sm:$0xff]  ;;  %v404_v26 = vld [vmem:[%s5119_s16 + $0x50] sm:$0xff] }
  0x32   : > { %4203 = vmatprep.mubr.msk.f32.mxu1 %vm433_vm3, %v358_v39  ;;  %v407_v27 = vld [vmem:[%s5119_s16 + $0x68] sm:$0xff]  ;;  %v406_v28 = vld [vmem:[%s5119_s16 + $0x60] sm:$0xff]  ;;  %v409_v29 = vld [vmem:[%s5119_s16 + $0x78] sm:$0xff] }
  0x33   : > { %4180 = vmatmul.mubr.msk.f32.gmra.mrb[12].mxu0 %vm433_vm3, %v343_v36  ;;  %1805 = vrot.lane.b32.xlu1 %v397_v17, %s4877_s17  ;;  %v408_v30 = vld [vmem:[%s5119_s16 + $0x70] sm:$0xff]  ;;  %v411_v31 = vld [vmem:[%s5119_s16 + $0x88] sm:$0xff]  ;;  %v410_v32 = vld [vmem:[%s5119_s16 + $0x80] sm:$0xff] }
  0x34   : > { %4182 = vmatprep.mubr.msk.f32.mxu0 %vm433_vm3, %v344_v37  ;;  %1803 = vrot.lane.b32.xlu0 %v396_v18, %s4877_s17  ;;  %v413_v33 = vld [vmem:[%s5119_s16 + $0x98] sm:$0xff]  ;;  %v412_v34 = vld [vmem:[%s5119_s16 + $0x90] sm:$0xff]  ;;  %v415_v35 = vld [vmem:[%s5119_s16 + $0xa8] sm:$0xff] }
  0x35   : > { %4204 = vmatmul.mubr.msk.f32.gmra.mrb[12].mxu1 %vm433_vm3, %v359_v41  ;;  %v414_v36 = vld [vmem:[%s5119_s16 + $0xa0] sm:$0xff]  ;;  %v417_v37 = vld [vmem:[%s5119_s16 + $0xb8] sm:$0xff]  ;;  %v416_v38 = vld [vmem:[%s5119_s16 + $0xb0] sm:$0xff] }
  0x36   : > { %4206 = vmatprep.mubr.msk.f32.mxu1 %vm433_vm3, %v360_v42  ;;  %v419_v39 = vld [vmem:[%s5119_s16 + $0xc8] sm:$0xff]  ;;  %v421_v41 = vld [vmem:[%s5119_s16 + $0xd8] sm:$0xff]  ;;  %v420_v42 = vld [vmem:[%s5119_s16 + $0xd0] sm:$0xff] }
  0x37   : > { %4183 = vmatmul.mubr.msk.f32.gmra.mrb[14].mxu0 %vm433_vm3, %v345_v40  ;;  %1809 = vrot.lane.b32.xlu1 %v399_v19, %s4877_s17  ;;  %v418_v40 = vld [vmem:[%s5119_s16 + $0xc0] sm:$0xff] }
  0x38   : > { %1807 = vrot.lane.b32.xlu0 %v398_v20, %s4877_s17 }
  0x39   : > { %4207 = vmatmul.mubr.msk.f32.gmra.mrb[14].mxu1 %vm433_vm3, %v361_v43  ;;  %v423_v43 = vld [vmem:[%s5119_s16 + $0xe8] sm:$0xff] }
  0x3a   : > { %4217 = vmatprep.mubr.msk.f32.mxu1 %vm831_vm4, %v362_v44  ;;  %v422_v44 = vld [vmem:[%s5119_s16 + $0xe0] sm:$0xff] }
  0x3b   : > { %1813 = vrot.lane.b32.xlu1 %v401_v21, %s4877_s17 }
  0x3c   : > { %1811 = vrot.lane.b32.xlu0 %v400_v22, %s4877_s17 }
  0x3d   : > { %4218 = vmatmul.mubr.msk.f32.vlgmr.msra.gmra.mrb[16].mxu1 %vm831_vm4, %v363_v47  ;;  %v424_v47 = vld [vmem:[%s5119_s16 + $0xf0] sm:$0xff] }
  0x3e   : > { %4450 = vmatpush3.bf16.msra.mxu1 %v4447_v23  ;;  %4220 = vmatprep.mubr.msk.f32.mxu1 %vm831_vm4, %v364_v48  ;;  %v403_v23 = vld [vmem:[%s5119_s16 + $0x48] sm:$0xff] }
  0x3f   : > { %4452 = vmatprep.subr.bf16.mxu1 %v4451_v49  ;;  %1817 = vrot.lane.b32.xlu1 %v403_v23, %s4877_s17 }
  0x40   : > { %1815 = vrot.lane.b32.xlu0 %v402_v24, %s4877_s17 }
  0x41   : > { %4221 = vmatmul.mubr.msk.f32.gmra.mrb[18].mxu1 %vm831_vm4, %v365_v50 }
  0x42   : > { %4223 = vmatprep.mubr.msk.f32.mxu1 %vm831_vm4, %v366_v51  ;;  %4454 = vmatpush3.bf16.msra.mxu1 %v4451_v49 }
  0x43   : > { %1821 = vrot.lane.b32.xlu1 %v405_v25, %s4877_s17 }
  0x44   : > { %1819 = vrot.lane.b32.xlu0 %v404_v26, %s4877_s17 }
  0x45   : > { %4224 = vmatmul.mubr.msk.f32.gmra.mrb[20].mxu1 %vm831_vm4, %v367_v52 }
  0x46   : > { %4226 = vmatprep.mubr.msk.f32.mxu1 %vm831_vm4, %v368_v53 }
  0x47   : > { %1825 = vrot.lane.b32.xlu1 %v407_v27, %s4877_s17 }
  0x48   : > { %1823 = vrot.lane.b32.xlu0 %v406_v28, %s4877_s17 }
  0x49   : > { %4227 = vmatmul.mubr.msk.f32.gmra.mrb[22].mxu1 %vm831_vm4, %v369_v54 }
  0x4a   : > { %4229 = vmatprep.mubr.msk.f32.mxu1 %vm831_vm4, %v370_v55 }
  0x4b   : > { %1829 = vrot.lane.b32.xlu1 %v409_v29, %s4877_s17 }
  0x4c   : > { %1827 = vrot.lane.b32.xlu0 %v408_v30, %s4877_s17 }
  0x4d   : > { %4230 = vmatmul.mubr.msk.f32.gmra.mrb[24].mxu1 %vm831_vm4, %v371_v56 }
  0x4e   : > { %4232 = vmatprep.mubr.msk.f32.mxu1 %vm831_vm4, %v372_v57 }
  0x4f   : > { %1833 = vrot.lane.b32.xlu1 %v411_v31, %s4877_s17 }
  0x50   : > { %1831 = vrot.lane.b32.xlu0 %v410_v32, %s4877_s17 }
  0x51   : > { %4233 = vmatmul.mubr.msk.f32.gmra.mrb[26].mxu1 %vm831_vm4, %v373_v58 }
  0x52   : > { %4235 = vmatprep.mubr.msk.f32.mxu1 %vm831_vm4, %v374_v59 }
  0x53   : > { %1837 = vrot.lane.b32.xlu1 %v413_v33, %s4877_s17 }
  0x54   : > { %1835 = vrot.lane.b32.xlu0 %v412_v34, %s4877_s17 }
  0x55   : > { %4236 = vmatmul.mubr.msk.f32.gmra.mrb[28].mxu1 %vm831_vm4, %v375_v60 }
  0x56   : > { %4238 = vmatprep.mubr.msk.f32.mxu1 %vm831_vm4, %v376_v61 }
  0x57   : > { %1841 = vrot.lane.b32.xlu1 %v415_v35, %s4877_s17 }
  0x58   : > { %1839 = vrot.lane.b32.xlu0 %v414_v36, %s4877_s17 }
  0x59   : > { %4239 = vmatmul.mubr.msk.f32.gmra.mrb[30].mxu1 %vm831_vm4, %v377_v62 }
  0x5a   : > { %4241 = vmatprep.mubr.msk.f32.mxu1 %vm831_vm4, %v378_v63 }
  0x5b   : > { %1845 = vrot.lane.b32.xlu1 %v417_v37, %s4877_s17 }
  0x5c   : > { %1843 = vrot.lane.b32.xlu0 %v416_v38, %s4877_s17 }
  0x5d   : > { %4242 = vmatmul.mubr.msk.f32.gmra.mrb[32].mxu1 %vm831_vm4, %v379_v0 }
  0x5e   : > { %4244 = vmatprep.mubr.msk.f32.mxu1 %vm831_vm4, %v380_v1 }
  0x5f   : > { %1849 = vrot.lane.b32.xlu1 %v419_v39, %s4877_s17 }
  0x60   : > { %1847 = vrot.lane.b32.xlu0 %v418_v40, %s4877_s17 }
  0x61   : > { %4245 = vmatmul.mubr.msk.f32.gmra.mrb[34].mxu1 %vm831_vm4, %v381_v2 }
  0x62   : > { %4247 = vmatprep.mubr.msk.f32.mxu1 %vm831_vm4, %v382_v3 }
  0x63   : > { %1853 = vrot.lane.b32.xlu1 %v421_v41, %s4877_s17 }
  0x64   : > { %1851 = vrot.lane.b32.xlu0 %v420_v42, %s4877_s17 }
  0x65   : > { %4248 = vmatmul.mubr.msk.f32.gmra.mrb[36].mxu1 %vm831_vm4, %v383_v4 }
  0x66   : > { %4250 = vmatprep.mubr.msk.f32.mxu1 %vm831_vm4, %v384_v5 }
  0x67   : > { %1857 = vrot.lane.b32.xlu1 %v423_v43, %s4877_s17 }
  0x68   : > { %1855 = vrot.lane.b32.xlu0 %v422_v44, %s4877_s17 }
  0x69   : > { %4251 = vmatmul.mubr.msk.f32.gmra.mrb[38].mxu1 %vm831_vm4, %v385_v6 }
  0x6a   : > { %4253 = vmatprep.mubr.msk.f32.mxu1 %vm831_vm4, %v386_v7 }
  0x6c   : > { %1859 = vrot.lane.b32.xlu0 %v424_v47, %s4877_s17 }
  0x6d   : > { %4254 = vmatmul.mubr.msk.f32.gmra.mrb[40].mxu1 %vm831_vm4, %v387_v8 }
  0x6e   : > { %4256 = vmatprep.mubr.msk.f32.mxu1 %vm831_vm4, %v388_v9 }
  0x71   : > { %4257 = vmatmul.mubr.msk.f32.gmra.mrb[42].mxu1 %vm831_vm4, %v389_v10 }
  0x72   : > { %4259 = vmatprep.mubr.msk.f32.mxu1 %vm831_vm4, %v390_v11 }
  0x75   : > { %4260 = vmatmul.mubr.msk.f32.gmra.mrb[44].mxu1 %vm831_vm4, %v391_v12 }
  0x76   : > { %4262 = vmatprep.mubr.msk.f32.mxu1 %vm831_vm4, %v392_v13 }
  0x79   : > { %4263 = vmatmul.mubr.msk.f32.gmra.mrb[46].mxu1 %vm831_vm4, %v393_v14 }
  0xee   : > { %v4163_v46 = vpop.f32.mrb[0].mxu0 }
  0xef   : > { %v606_v48 = vadd.f32 %v4163_v46, %v5182_v45  ;;  %v600_v49 = vpop.f32.mrb[1].mxu0 }
  0xf0   : > { %v601_v50 = vadd.f32 %v5182_v45, %v600_v49  ;;  %v5191_v56 = vpop.f32.mrb[0].mxu1 }
  0xf1   : > { %v760_v51 = vmul.f32 0.01, %v606_v48  ;;  %v680_v59 = vpop.f32.mrb[1].mxu1 }
  0xf2   : > { %v759_v52 = vmul.f32 0.01, %v601_v50  ;;  %v4166_v53 = vpop.f32.mrb[2].mxu0  ;;  %v681_v47 = vadd.f32 %v5182_v45, %v680_v59 }
  0xf3   : > { %v616_v54 = vadd.f32 %v4166_v53, %v5182_v45  ;;  %v610_v55 = vpop.f32.mrb[3].mxu0  ;;  %v792_v60 = vmax.f32 %v606_v48, %v760_v51 }
  0xf4   : > { %v791_v57 = vmax.f32 %v601_v50, %v759_v52  ;;  %v611_v58 = vadd.f32 %v5182_v45, %v610_v55  ;;  %v5197_v3 = vpop.f32.mrb[2].mxu1  ;;  %v686_v55 = vadd.f32 %v5191_v56, %v5182_v45  ;;  %v775_v59 = vmul.f32 0.01, %v681_v47 }
  0xf5   : > { %v762_v61 = vmul.f32 0.01, %v616_v54  ;;  %v5200_v6 = vpop.f32.mrb[3].mxu1  ;;  %v696_v56 = vadd.f32 %v5197_v3, %v5182_v45 }
  0xf6   : > { %v761_v62 = vmul.f32 0.01, %v611_v58  ;;  %v4169_v63 = vpop.f32.mrb[4].mxu0  ;;  %4273 = vmatprep.mubr.msk.f32.mxu1 %vm831_vm4, %v791_v57 }
  0xf7   : > { %v794_v0 = vmax.f32 %v616_v54, %v762_v61  ;;  %v626_v1 = vadd.f32 %v4169_v63, %v5182_v45  ;;  %v620_v2 = vpop.f32.mrb[5].mxu0  ;;  %4274 = vmatmul.mubr.msk.f32.vlgmr.msra.gmra.mrb[16].mxu1 %vm831_vm4, %v792_v60  ;;  %v691_v61 = vadd.f32 %v5182_v45, %v5200_v6 }
  0xf8   : > { %v793_v4 = vmax.f32 %v611_v58, %v761_v62  ;;  %v621_v5 = vadd.f32 %v5182_v45, %v620_v2  ;;  %v5205_v13 = vpop.f32.mrb[4].mxu1  ;;  %v776_v2 = vmul.f32 0.01, %v686_v55 }
  0xf9   : > { %v764_v7 = vmul.f32 0.01, %v626_v1  ;;  %v5208_v16 = vpop.f32.mrb[5].mxu1 }
  0xfa   : > { %v763_v8 = vmul.f32 0.01, %v621_v5  ;;  %v4172_v9 = vpop.f32.mrb[6].mxu0  ;;  %4276 = vmatprep.mubr.msk.f32.mxu1 %vm831_vm4, %v793_v4 }
  0xfb   : > { %v796_v10 = vmax.f32 %v626_v1, %v764_v7  ;;  %v636_v11 = vadd.f32 %v4172_v9, %v5182_v45  ;;  %v630_v12 = vpop.f32.mrb[7].mxu0  ;;  %4277 = vmatmul.mubr.msk.f32.gmra.mrb[18].mxu1 %vm831_vm4, %v794_v0  ;;  %v807_v7 = vmax.f32 %v681_v47, %v775_v59  ;;  %v701_v9 = vadd.f32 %v5182_v45, %v5208_v16 }
  0xfc   : > { %v795_v14 = vmax.f32 %v621_v5, %v763_v8  ;;  %v631_v15 = vadd.f32 %v5182_v45, %v630_v12  ;;  %v5213_v23 = vpop.f32.mrb[6].mxu1  ;;  %v777_v8 = vmul.f32 0.01, %v691_v61  ;;  %v706_v12 = vadd.f32 %v5205_v13, %v5182_v45 }
  0xfd   : > { %v766_v17 = vmul.f32 0.01, %v636_v11  ;;  %v710_v26 = vpop.f32.mrb[7].mxu1  ;;  %v779_v3 = vmul.f32 0.01, %v701_v9  ;;  %v716_v16 = vadd.f32 %v5213_v23, %v5182_v45 }
  0xfe   : > { %v765_v18 = vmul.f32 0.01, %v631_v15  ;;  %v4175_v19 = vpop.f32.mrb[8].mxu0  ;;  %4279 = vmatprep.mubr.msk.f32.mxu1 %vm831_vm4, %v795_v14  ;;  %v809_v14 = vmax.f32 %v691_v61, %v777_v8 }
  0xff   : > { %v798_v20 = vmax.f32 %v636_v11, %v766_v17  ;;  %v646_v21 = vadd.f32 %v4175_v19, %v5182_v45  ;;  %v640_v22 = vpop.f32.mrb[9].mxu0  ;;  %4280 = vmatmul.mubr.msk.f32.gmra.mrb[20].mxu1 %vm831_vm4, %v796_v10  ;;  %v808_v10 = vmax.f32 %v686_v55, %v776_v2  ;;  %v778_v11 = vmul.f32 0.01, %v696_v56 }
 0x100   : > { %v797_v24 = vmax.f32 %v631_v15, %v765_v18  ;;  %v641_v25 = vadd.f32 %v5182_v45, %v640_v22  ;;  %v5219_v33 = vpop.f32.mrb[8].mxu1  ;;  %v711_v15 = vadd.f32 %v5182_v45, %v710_v26  ;;  %v780_v18 = vmul.f32 0.01, %v706_v12 }
 0x101   : > { %v768_v27 = vmul.f32 0.01, %v646_v21  ;;  %v720_v36 = vpop.f32.mrb[9].mxu1  ;;  %v810_v17 = vmax.f32 %v696_v56, %v778_v11  ;;  %v811_v19 = vmax.f32 %v701_v9, %v779_v3  ;;  %v782_v22 = vmul.f32 0.01, %v716_v16 }
 0x102   : > { %v767_v28 = vmul.f32 0.01, %v641_v25  ;;  %v4178_v29 = vpop.f32.mrb[10].mxu0  ;;  %4282 = vmatprep.mubr.msk.f32.mxu1 %vm831_vm4, %v797_v24  ;;  %v812_v13 = vmax.f32 %v706_v12, %v780_v18  ;;  %v726_v24 = vadd.f32 %v5219_v33, %v5182_v45 }
 0x103   : > { %v800_v30 = vmax.f32 %v646_v21, %v768_v27  ;;  %v656_v31 = vadd.f32 %v4178_v29, %v5182_v45  ;;  %v650_v32 = vpop.f32.mrb[11].mxu0  ;;  %4283 = vmatmul.mubr.msk.f32.gmra.mrb[22].mxu1 %vm831_vm4, %v798_v20  ;;  %v781_v20 = vmul.f32 0.01, %v711_v15  ;;  %v721_v21 = vadd.f32 %v5182_v45, %v720_v36 }
 0x104   : > { %v799_v34 = vmax.f32 %v641_v25, %v767_v28  ;;  %v651_v35 = vadd.f32 %v5182_v45, %v650_v32  ;;  %v4202_v43 = vpop.f32.mrb[10].mxu1  ;;  %v814_v23 = vmax.f32 %v716_v16, %v782_v22  ;;  %v784_v28 = vmul.f32 0.01, %v726_v24 }
 0x105   : > { %v770_v37 = vmul.f32 0.01, %v656_v31  ;;  %v730_v48 = vpop.f32.mrb[11].mxu1  ;;  %v813_v25 = vmax.f32 %v711_v15, %v781_v20  ;;  %v783_v26 = vmul.f32 0.01, %v721_v21  ;;  %v736_v29 = vadd.f32 %v4202_v43, %v5182_v45 }
 0x106   : > { %v769_v38 = vmul.f32 0.01, %v651_v35  ;;  %v4181_v39 = vpop.f32.mrb[12].mxu0  ;;  %4285 = vmatprep.mubr.msk.f32.mxu1 %vm831_vm4, %v799_v34  ;;  %v731_v27 = vadd.f32 %v5182_v45, %v730_v48  ;;  %v816_v34 = vmax.f32 %v726_v24, %v784_v28 }
 0x107   : > { %v802_v40 = vmax.f32 %v656_v31, %v770_v37  ;;  %v666_v41 = vadd.f32 %v4181_v39, %v5182_v45  ;;  %v660_v42 = vpop.f32.mrb[13].mxu0  ;;  %4286 = vmatmul.mubr.msk.f32.gmra.mrb[24].mxu1 %vm831_vm4, %v800_v30  ;;  %v815_v30 = vmax.f32 %v721_v21, %v783_v26  ;;  %v786_v33 = vmul.f32 0.01, %v736_v29 }
 0x108   : > { %v801_v44 = vmax.f32 %v651_v35, %v769_v38  ;;  %v661_v46 = vadd.f32 %v5182_v45, %v660_v42  ;;  %v4205_v57 = vpop.f32.mrb[12].mxu1  ;;  %v785_v31 = vmul.f32 0.01, %v731_v27 }
 0x109   : > { %v772_v49 = vmul.f32 0.01, %v666_v41  ;;  %v740_v62 = vpop.f32.mrb[13].mxu1  ;;  %v746_v35 = vadd.f32 %v4205_v57, %v5182_v45  ;;  %v818_v39 = vmax.f32 %v736_v29, %v786_v33 }
 0x10a   : > { %v771_v50 = vmul.f32 0.01, %v661_v46  ;;  %v4184_v51 = vpop.f32.mrb[14].mxu0  ;;  %4288 = vmatprep.mubr.msk.f32.mxu1 %vm831_vm4, %v801_v44  ;;  %v741_v32 = vadd.f32 %v5182_v45, %v740_v62  ;;  %v817_v36 = vmax.f32 %v731_v27, %v785_v31 }
 0x10b   : > { %v804_v52 = vmax.f32 %v666_v41, %v772_v49  ;;  %v676_v53 = vadd.f32 %v4184_v51, %v5182_v45  ;;  %v670_v54 = vpop.f32.mrb[15].mxu0  ;;  %4289 = vmatmul.mubr.msk.f32.gmra.mrb[26].mxu1 %vm831_vm4, %v802_v40  ;;  %v788_v40 = vmul.f32 0.01, %v746_v35 }
 0x10c   : > { %v803_v58 = vmax.f32 %v661_v46, %v771_v50  ;;  %v671_v60 = vadd.f32 %v5182_v45, %v670_v54  ;;  %v4208_v4 = vpop.f32.mrb[14].mxu1  ;;  %v787_v37 = vmul.f32 0.01, %v741_v32 }
 0x10d   : > { %v774_v63 = vmul.f32 0.01, %v676_v53  ;;  %v750_v6 = vpop.f32.mrb[15].mxu1  ;;  %v756_v41 = vadd.f32 %v4208_v4, %v5182_v45  ;;  %v820_v44 = vmax.f32 %v746_v35, %v788_v40 }
 0x10e   : > { %v773_v0 = vmul.f32 0.01, %v671_v60  ;;  %4291 = vmatprep.mubr.msk.f32.mxu1 %vm831_vm4, %v803_v58  ;;  %v751_v38 = vadd.f32 %v5182_v45, %v750_v6  ;;  %v819_v42 = vmax.f32 %v741_v32, %v787_v37  ;;  %v5276_v45 = vld [vmem:[%s6388_s4 + $0x1] ss:$0 sm:$0xff] }
 0x10f   : > { %v806_v1 = vmax.f32 %v676_v53, %v774_v63  ;;  %4292 = vmatmul.mubr.msk.f32.gmra.mrb[28].mxu1 %vm831_vm4, %v804_v52  ;;  %v790_v46 = vmul.f32 0.01, %v756_v41 }
 0x110   : > { %v805_v5 = vmax.f32 %v671_v60, %v773_v0  ;;  %v789_v43 = vmul.f32 0.01, %v751_v38 }
 0x111   : > { %v822_v48 = vmax.f32 %v756_v41, %v790_v46 }
 0x112   : > { %4294 = vmatprep.mubr.msk.f32.mxu1 %vm831_vm4, %v805_v5  ;;  %v821_v47 = vmax.f32 %v751_v38, %v789_v43 }
 0x113   : > { %4295 = vmatmul.mubr.msk.f32.gmra.mrb[30].mxu1 %vm831_vm4, %v806_v1 }
 0x114   : > { %4297 = vmatprep.mubr.msk.f32.mxu1 %vm831_vm4, %v807_v7 }
 0x117   : > { %4298 = vmatmul.mubr.msk.f32.gmra.mrb[32].mxu1 %vm831_vm4, %v808_v10 }
 0x118   : > { %4300 = vmatprep.mubr.msk.f32.mxu1 %vm831_vm4, %v809_v14 }
 0x11b   : > { %4301 = vmatmul.mubr.msk.f32.gmra.mrb[34].mxu1 %vm831_vm4, %v810_v17 }
 0x11c   : > { %4303 = vmatprep.mubr.msk.f32.mxu1 %vm831_vm4, %v811_v19 }
 0x11f   : > { %4304 = vmatmul.mubr.msk.f32.gmra.mrb[36].mxu1 %vm831_vm4, %v812_v13 }
 0x120   : > { %4306 = vmatprep.mubr.msk.f32.mxu1 %vm831_vm4, %v813_v25 }
 0x123   : > { %4307 = vmatmul.mubr.msk.f32.gmra.mrb[38].mxu1 %vm831_vm4, %v814_v23 }
 0x124   : > { %4309 = vmatprep.mubr.msk.f32.mxu1 %vm831_vm4, %v815_v30 }
 0x127   : > { %4310 = vmatmul.mubr.msk.f32.gmra.mrb[40].mxu1 %vm831_vm4, %v816_v34 }
 0x128   : > { %4312 = vmatprep.mubr.msk.f32.mxu1 %vm831_vm4, %v817_v36 }
 0x12b   : > { %4313 = vmatmul.mubr.msk.f32.gmra.mrb[42].mxu1 %vm831_vm4, %v818_v39 }
 0x12c   : > { %4315 = vmatprep.mubr.msk.f32.mxu1 %vm831_vm4, %v819_v42 }
 0x12f   : > { %4316 = vmatmul.mubr.msk.f32.gmra.mrb[44].mxu1 %vm831_vm4, %v820_v44 }
 0x130   : > { %4318 = vmatprep.mubr.msk.f32.mxu1 %vm831_vm4, %v821_v47 }
 0x133   : > { %4319 = vmatmul.mubr.msk.f32.gmra.mrb[46].mxu1 %vm831_vm4, %v822_v48 }
 0x1ca   : > { %v4275_v49 = vpop.f32.mrb[16].mxu1 }
 0x1cb   : > { %v1480_v50 = vadd.f32 %v4275_v49, %v5276_v45  ;;  %v1315_v51 = vpop.f32.mrb[17].mxu1 }
 0x1cc   : > { %v1479_v52 = vadd.f32 %v5276_v45, %v1315_v51 }
 0x1cd   : > { %v3830_v53 = vmul.f32 -1.442695, %v1480_v50 }
 0x1ce   : > { %v3829_v54 = vmul.f32 -1.442695, %v1479_v52  ;;  %v4278_v55 = vpop.f32.mrb[18].mxu1 }
 0x1cf   : > { %4596 = vpow2.f32 %v3830_v53  ;;  %v1482_v57 = vadd.f32 %v4278_v55, %v5276_v45  ;;  %v1325_v58 = vpop.f32.mrb[19].mxu1 }
 0x1d0   : > { %4598 = vpow2.f32 %v3829_v54  ;;  %v1481_v60 = vadd.f32 %v5276_v45, %v1325_v58 }
 0x1d1   : > { %v3832_v59 = vmul.f32 -1.442695, %v1482_v57 }
 0x1d2   : > { %v3831_v61 = vmul.f32 -1.442695, %v1481_v60  ;;  %v4281_v62 = vpop.f32.mrb[20].mxu1 }
 0x1d3   : > { %4600 = vpow2.f32 %v3832_v59  ;;  %v1484_v63 = vadd.f32 %v4281_v62, %v5276_v45  ;;  %v1335_v0 = vpop.f32.mrb[21].mxu1 }
 0x1d4   : > { %4602 = vpow2.f32 %v3831_v61  ;;  %v1483_v1 = vadd.f32 %v5276_v45, %v1335_v0 }
 0x1d5   : > { %v3834_v2 = vmul.f32 -1.442695, %v1484_v63 }
 0x1d6   : > { %v3833_v56 = vmul.f32 -1.442695, %v1483_v1  ;;  %v4284_v4 = vpop.f32.mrb[22].mxu1 }
 0x1d7   : > { %4604 = vpow2.f32 %v3834_v2  ;;  %v1486_v5 = vadd.f32 %v4284_v4, %v5276_v45  ;;  %v1345_v7 = vpop.f32.mrb[23].mxu1 }
 0x1d8   : > { %4606 = vpow2.f32 %v3833_v56  ;;  %v1485_v8 = vadd.f32 %v5276_v45, %v1345_v7 }
 0x1d9   : > { %v4597_v9 = vpop.eup %4596  ;;  %v3836_v6 = vmul.f32 -1.442695, %v1486_v5 }
 0x1da   : > { %v4599_v10 = vpop.eup %4598  ;;  %v1608_v11 = vadd.f32 1.0, %v4597_v9  ;;  %v3835_v12 = vmul.f32 -1.442695, %v1485_v8  ;;  %v4287_v14 = vpop.f32.mrb[24].mxu1 }
 0x1db   : > { %v1607_v3 = vadd.f32 1.0, %v4599_v10  ;;  %4608 = vpow2.f32 %v3836_v6  ;;  %v1488_v15 = vadd.f32 %v4287_v14, %v5276_v45  ;;  %v1355_v17 = vpop.f32.mrb[25].mxu1 }
 0x1dc   : > { %4610 = vrcp.f32 %v1608_v11  ;;  %v1487_v18 = vadd.f32 %v5276_v45, %v1355_v17 }
 0x1dd   : > { %v4601_v16 = vpop.eup %4600  ;;  %4612 = vrcp.f32 %v1607_v3  ;;  %v3838_v19 = vmul.f32 -1.442695, %v1488_v15 }
 0x1de   : > { %v4603_v20 = vpop.eup %4602  ;;  %v1610_v21 = vadd.f32 1.0, %v4601_v16  ;;  %4614 = vpow2.f32 %v3835_v12  ;;  %v3837_v13 = vmul.f32 -1.442695, %v1487_v18  ;;  %v4290_v22 = vpop.f32.mrb[26].mxu1 }
 0x1df   : > { %v1609_v24 = vadd.f32 1.0, %v4603_v20  ;;  %4616 = vpow2.f32 %v3838_v19  ;;  %v1490_v25 = vadd.f32 %v4290_v22, %v5276_v45  ;;  %v1365_v26 = vpop.f32.mrb[27].mxu1 }
 0x1e0   : > { %4618 = vrcp.f32 %v1610_v21  ;;  %v1489_v27 = vadd.f32 %v5276_v45, %v1365_v26 }
 0x1e1   : > { %v4605_v23 = vpop.eup %4604  ;;  %4620 = vrcp.f32 %v1609_v24  ;;  %v3840_v28 = vmul.f32 -1.442695, %v1490_v25 }
 0x1e2   : > { %v4607_v29 = vpop.eup %4606  ;;  %v1612_v30 = vadd.f32 1.0, %v4605_v23  ;;  %4622 = vpow2.f32 %v3837_v13  ;;  %v3839_v31 = vmul.f32 -1.442695, %v1489_v27  ;;  %v4293_v32 = vpop.f32.mrb[28].mxu1 }
 0x1e3   : > { %v1611_v34 = vadd.f32 1.0, %v4607_v29  ;;  %4624 = vpow2.f32 %v3840_v28  ;;  %v1492_v33 = vadd.f32 %v4293_v32, %v5276_v45  ;;  %v1375_v35 = vpop.f32.mrb[29].mxu1 }
 0x1e4   : > { %4626 = vrcp.f32 %v1612_v30  ;;  %v1491_v36 = vadd.f32 %v5276_v45, %v1375_v35 }
 0x1e5   : > { %v4609_v37 = vpop.eup %4608  ;;  %4628 = vrcp.f32 %v1611_v34  ;;  %v3842_v38 = vmul.f32 -1.442695, %v1492_v33 }
 0x1e6   : > { %v5292_v39 = vpop.eup %4610  ;;  %v1614_v40 = vadd.f32 1.0, %v4609_v37  ;;  %4630 = vpow2.f32 %v3839_v31  ;;  %v3841_v41 = vmul.f32 -1.442695, %v1491_v36  ;;  %v4296_v42 = vpop.f32.mrb[30].mxu1 }
 0x1e7   : > { %v5294_v43 = vpop.eup %4612  ;;  %4632 = vpow2.f32 %v3842_v38  ;;  %v1494_v44 = vadd.f32 %v4296_v42, %v5276_v45  ;;  %v1385_v46 = vpop.f32.mrb[31].mxu1  ;;  %v1704_v47 = vmul.f32 2.0, %v5292_v39 }
 0x1e8   : > { %v4615_v48 = vpop.eup %4614  ;;  %4634 = vrcp.f32 %v1614_v40  ;;  %v1493_v49 = vadd.f32 %v5276_v45, %v1385_v46  ;;  %v1703_v50 = vmul.f32 2.0, %v5294_v43 }
 0x1e9   : > { %v4617_v51 = vpop.eup %4616  ;;  %v1613_v52 = vadd.f32 1.0, %v4615_v48  ;;  %4636 = vpow2.f32 %v3841_v41  ;;  %v3844_v53 = vmul.f32 -1.442695, %v1494_v44  ;;  %v3862_v54 = vadd.f32 -1.0, %v1704_v47 }
 0x1ea   : > { %v5300_v55 = vpop.eup %4618  ;;  %v1616_v57 = vadd.f32 1.0, %v4617_v51  ;;  %v3843_v58 = vmul.f32 -1.442695, %v1493_v49  ;;  %v4299_v60 = vpop.f32.mrb[32].mxu1  ;;  %v3861_v2 = vadd.f32 -1.0, %v1703_v50 }
 0x1eb   : > { %v5302_v59 = vpop.eup %4620  ;;  %4638 = vrcp.f32 %v1613_v52  ;;  %v1496_v61 = vadd.f32 %v4299_v60, %v5276_v45  ;;  %1961 = vrot.lane.b32.xlu0 %v3862_v54, %s4878_s27  ;;  %v1395_v62 = vpop.f32.mrb[33].mxu1  ;;  %v1706_v63 = vmul.f32 2.0, %v5300_v55 }
 0x1ec   : > { %v4623_v0 = vpop.eup %4622  ;;  %4640 = vrcp.f32 %v1616_v57  ;;  %v1495_v1 = vadd.f32 %v5276_v45, %v1395_v62  ;;  %v1705_v56 = vmul.f32 2.0, %v5302_v59 }
 0x1ed   : > { %v4625_v4 = vpop.eup %4624  ;;  %v1615_v5 = vadd.f32 1.0, %v4623_v0  ;;  %4642 = vpow2.f32 %v3844_v53  ;;  %v3846_v7 = vmul.f32 -1.442695, %v1496_v61  ;;  %v3864_v8 = vadd.f32 -1.0, %v1706_v63 }
 0x1ee   : > { %v5309_v9 = vpop.eup %4626  ;;  %v1618_v6 = vadd.f32 1.0, %v4625_v4  ;;  %4644 = vpow2.f32 %v3843_v58  ;;  %v3845_v10 = vmul.f32 -1.442695, %v1495_v1  ;;  %v4302_v11 = vpop.f32.mrb[34].mxu1  ;;  %v3863_v18 = vadd.f32 -1.0, %v1705_v56 }
 0x1ef   : > { %v5311_v12 = vpop.eup %4628  ;;  %4646 = vrcp.f32 %v1615_v5  ;;  %v1498_v14 = vadd.f32 %v4302_v11, %v5276_v45  ;;  %1959 = vrot.lane.b32.xlu0 %v3861_v2, %s4878_s27  ;;  %1965 = vrot.lane.b32.xlu1 %v3864_v8, %s4878_s27  ;;  %v1405_v3 = vpop.f32.mrb[35].mxu1  ;;  %v1708_v13 = vmul.f32 2.0, %v5309_v9 }
 0x1f0   : > { %v4631_v15 = vpop.eup %4630  ;;  %4648 = vrcp.f32 %v1618_v6  ;;  %v1497_v17 = vadd.f32 %v5276_v45, %v1405_v3  ;;  %v1707_v16 = vmul.f32 2.0, %v5311_v12 }
 0x1f1   : > { %v4633_v19 = vpop.eup %4632  ;;  %v1617_v20 = vadd.f32 1.0, %v4631_v15  ;;  %4650 = vpow2.f32 %v3846_v7  ;;  %v3848_v21 = vmul.f32 -1.442695, %v1498_v14  ;;  %v3866_v35 = vadd.f32 -1.0, %v1708_v13 }
 0x1f2   : > { %v5319_v22 = vpop.eup %4634  ;;  %v1620_v24 = vadd.f32 1.0, %v4633_v19  ;;  %4652 = vpow2.f32 %v3845_v10  ;;  %v4305_v25 = vpop.f32.mrb[36].mxu1  ;;  %v3865_v26 = vadd.f32 -1.0, %v1707_v16  ;;  %v3847_v23 = vmul.f32 -1.442695, %v1497_v17 }
 0x1f3   : > { %v4637_v27 = vpop.eup %4636  ;;  %4654 = vrcp.f32 %v1617_v20  ;;  %v1500_v28 = vadd.f32 %v4305_v25, %v5276_v45  ;;  %1963 = vrot.lane.b32.xlu1 %v3863_v18, %s4878_s27  ;;  %v1415_v29 = vpop.f32.mrb[37].mxu1  ;;  %v1710_v30 = vmul.f32 2.0, %v5319_v22 }
 0x1f4   : > { %4656 = vrcp.f32 %v1620_v24  ;;  %v1619_v31 = vadd.f32 1.0, %v4637_v27  ;;  %v1499_v32 = vadd.f32 %v5276_v45, %v1415_v29  ;;  %1967 = vrot.lane.b32.xlu0 %v3865_v26, %s4878_s27  ;;  %v5351_v18 = vpop.permute.xlu0 %1799 }
 0x1f5   : > { %v5326_v34 = vpop.eup %4638  ;;  %4658 = vpow2.f32 %v3848_v21  ;;  %v3850_v33 = vmul.f32 -1.442695, %v1500_v28  ;;  %v3868_v46 = vadd.f32 -1.0, %v1710_v30 }
 0x1f6   : > { %v5328_v36 = vpop.eup %4640  ;;  %4660 = vrcp.f32 %v1619_v31  ;;  %v3849_v37 = vmul.f32 -1.442695, %v1499_v32  ;;  %v4308_v38 = vpop.f32.mrb[38].mxu1  ;;  %v1709_v40 = vmul.f32 2.0, %v5326_v34 }
 0x1f7   : > { %v4643_v41 = vpop.eup %4642  ;;  %4662 = vpow2.f32 %v3847_v23  ;;  %v1502_v42 = vadd.f32 %v4308_v38, %v5276_v45  ;;  %1969 = vrot.lane.b32.xlu1 %v3866_v35, %s4878_s27  ;;  %v1425_v44 = vpop.f32.mrb[39].mxu1  ;;  %v1712_v54 = vmul.f32 2.0, %v5328_v36 }
 0x1f8   : > { %v4645_v47 = vpop.eup %4644  ;;  %v1622_v48 = vadd.f32 1.0, %v4643_v41  ;;  %4664 = vpow2.f32 %v3850_v33  ;;  %v1501_v49 = vadd.f32 %v5276_v45, %v1425_v44  ;;  %v3867_v50 = vadd.f32 -1.0, %v1709_v40 }
 0x1f9   : > { %v5334_v51 = vpop.eup %4646  ;;  %v1621_v52 = vadd.f32 1.0, %v4645_v47  ;;  %4666 = vpow2.f32 %v3849_v37  ;;  %v3852_v53 = vmul.f32 -1.442695, %v1502_v42  ;;  %v3870_v10 = vadd.f32 -1.0, %v1712_v54  ;;  %v5368_v47 = vpop.permute.xlu0 %1803 }
 0x1fa   : > { %v5337_v57 = vpop.eup %4648  ;;  %4668 = vrcp.f32 %v1622_v48  ;;  %v3851_v58 = vmul.f32 -1.442695, %v1501_v49  ;;  %1971 = vrot.lane.b32.xlu0 %v3867_v50, %s4878_s27  ;;  %v4311_v60 = vpop.f32.mrb[40].mxu1  ;;  %v1711_v61 = vmul.f32 2.0, %v5334_v51 }
 0x1fb   : > { %v4651_v62 = vpop.eup %4650  ;;  %4670 = vrcp.f32 %v1621_v52  ;;  %v1504_v63 = vadd.f32 %v4311_v60, %v5276_v45  ;;  %1973 = vrot.lane.b32.xlu1 %v3868_v46, %s4878_s27  ;;  %v1435_v0 = vpop.f32.mrb[41].mxu1  ;;  %v1714_v1 = vmul.f32 2.0, %v5337_v57 }
 0x1fc   : > { %v4653_v2 = vpop.eup %4652  ;;  %v1624_v56 = vadd.f32 1.0, %v4651_v62  ;;  %4672 = vpow2.f32 %v3852_v53  ;;  %v1503_v4 = vadd.f32 %v5276_v45, %v1435_v0  ;;  %v3869_v5 = vadd.f32 -1.0, %v1711_v61 }
 0x1fd   : > { %v5345_v7 = vpop.eup %4654  ;;  %v1623_v8 = vadd.f32 1.0, %v4653_v2  ;;  %4674 = vpow2.f32 %v3851_v58  ;;  %v3854_v6 = vmul.f32 -1.442695, %v1504_v63  ;;  %v3872_v20 = vadd.f32 -1.0, %v1714_v1 }
 0x1fe   : > { %v5347_v11 = vpop.eup %4656  ;;  %4676 = vrcp.f32 %v1624_v56  ;;  %v3853_v14 = vmul.f32 -1.442695, %v1503_v4  ;;  %1975 = vrot.lane.b32.xlu0 %v3869_v5, %s4878_s27  ;;  %v4314_v3 = vpop.f32.mrb[42].mxu1  ;;  %v1713_v15 = vmul.f32 2.0, %v5345_v7 }
 0x1ff   : > { %v4659_v17 = vpop.eup %4658  ;;  %4678 = vrcp.f32 %v1623_v8  ;;  %v1506_v16 = vadd.f32 %v4314_v3, %v5276_v45  ;;  %1977 = vrot.lane.b32.xlu1 %v3870_v10, %s4878_s27  ;;  %v1445_v19 = vpop.f32.mrb[43].mxu1  ;;  %v1716_v28 = vmul.f32 2.0, %v5347_v11 }
 0x200   : > { %v5355_v21 = vpop.eup %4660  ;;  %v1626_v13 = vadd.f32 1.0, %v4659_v17  ;;  %4680 = vpow2.f32 %v3854_v6  ;;  %v1505_v24 = vadd.f32 %v5276_v45, %v1445_v19  ;;  %v3871_v25 = vadd.f32 -1.0, %v1713_v15  ;;  %v5380_v5 = vpop.permute.xlu1 %1801 }
 0x201   : > { %v4663_v26 = vpop.eup %4662  ;;  %4682 = vpow2.f32 %v3853_v14  ;;  %v3856_v27 = vmul.f32 -1.442695, %v1506_v16  ;;  %v1715_v23 = vmul.f32 2.0, %v5355_v21  ;;  %v3874_v49 = vadd.f32 -1.0, %v1716_v28  ;;  %v5385_v17 = vpop.permute.xlu0 %1807 }
 0x202   : > { %v4665_v29 = vpop.eup %4664  ;;  %4684 = vrcp.f32 %v1626_v13  ;;  %v1625_v30 = vadd.f32 1.0, %v4663_v26  ;;  %v3855_v31 = vmul.f32 -1.442695, %v1505_v24  ;;  %1979 = vrot.lane.b32.xlu0 %v3871_v25, %s4878_s27  ;;  %v4317_v32 = vpop.f32.mrb[44].mxu1 }
 0x203   : > { %v4667_v33 = vpop.eup %4666  ;;  %v1628_v35 = vadd.f32 1.0, %v4665_v29  ;;  %4686 = vpow2.f32 %v3856_v27  ;;  %v1508_v37 = vadd.f32 %v4317_v32, %v5276_v45  ;;  %1981 = vrot.lane.b32.xlu1 %v3872_v20, %s4878_s27  ;;  %v1455_v38 = vpop.f32.mrb[45].mxu1  ;;  %v3873_v40 = vadd.f32 -1.0, %v1715_v23 }
 0x204   : > { %v5363_v41 = vpop.eup %4668  ;;  %4688 = vrcp.f32 %v1625_v30  ;;  %v1627_v42 = vadd.f32 1.0, %v4667_v33  ;;  %v1507_v44 = vadd.f32 %v5276_v45, %v1455_v38  ;;  %v5396_v29 = vpop.permute.xlu1 %1805 }
 0x205   : > { %v5366_v46 = vpop.eup %4670  ;;  %4690 = vrcp.f32 %v1628_v35  ;;  %v3858_v48 = vmul.f32 -1.442695, %v1508_v37  ;;  %v1718_v50 = vmul.f32 2.0, %v5363_v41  ;;  %v5402_v33 = vpop.permute.xlu0 %1811 }
 0x206   : > { %v4673_v52 = vpop.eup %4672  ;;  %4692 = vrcp.f32 %v1627_v42  ;;  %1983 = vrot.lane.b32.xlu0 %v3873_v40, %s4878_s27  ;;  %v4320_v53 = vpop.f32.mrb[46].mxu1  ;;  %v1717_v54 = vmul.f32 2.0, %v5366_v46  ;;  %v3857_v61 = vmul.f32 -1.442695, %v1507_v44 }
 0x207   : > { %v4675_v58 = vpop.eup %4674  ;;  %v1630_v60 = vadd.f32 1.0, %v4673_v52  ;;  %4694 = vpow2.f32 %v3855_v31  ;;  %v1510_v62 = vadd.f32 %v4320_v53, %v5276_v45  ;;  %1985 = vrot.lane.b32.xlu1 %v3874_v49, %s4878_s27  ;;  %v1465_v63 = vpop.f32.mrb[47].mxu1  ;;  %v3876_v6 = vadd.f32 -1.0, %v1718_v50 }
 0x208   : > { %v5375_v0 = vpop.eup %4676  ;;  %v1629_v1 = vadd.f32 1.0, %v4675_v58  ;;  %4696 = vpow2.f32 %v3858_v48  ;;  %v1509_v2 = vadd.f32 %v5276_v45, %v1465_v63  ;;  %v3875_v56 = vadd.f32 -1.0, %v1717_v54  ;;  %v5412_v54 = vpop.permute.xlu1 %1809 }
 0x209   : > { %v5378_v4 = vpop.eup %4678  ;;  %4698 = vrcp.f32 %v1630_v60  ;;  %v3860_v8 = vmul.f32 -1.442695, %v1510_v62  ;;  %v1720_v10 = vmul.f32 2.0, %v5375_v0 }
 0x20a   : > { %v4681_v14 = vpop.eup %4680  ;;  %4700 = vrcp.f32 %v1629_v1  ;;  %1987 = vrot.lane.b32.xlu0 %v3875_v56, %s4878_s27  ;;  %v1719_v3 = vmul.f32 2.0, %v5378_v4  ;;  %v3859_v16 = vmul.f32 -1.442695, %v1509_v2  ;;  %v5418_v2 = vpop.permute.xlu0 %1815 }
 0x20b   : > { %v4683_v15 = vpop.eup %4682  ;;  %v1632_v45 = vadd.f32 1.0, %v4681_v14  ;;  %4702 = vpow2.f32 %v3857_v61  ;;  %1989 = vrot.lane.b32.xlu1 %v3876_v6, %s4878_s27  ;;  %v3878_v25 = vadd.f32 -1.0, %v1720_v10 }
 0x20c   : > { %v5388_v19 = vpop.eup %4684  ;;  %v1631_v20 = vadd.f32 1.0, %v4683_v15  ;;  %4704 = vpow2.f32 %v3860_v8  ;;  %v3877_v13 = vadd.f32 -1.0, %v1719_v3 }
 0x20d   : > { %v4687_v24 = vpop.eup %4686  ;;  %4706 = vrcp.f32 %v1632_v45  ;;  %v1722_v26 = vmul.f32 2.0, %v5388_v19 }
 0x20e   : > { %v5391_v27 = vpop.eup %4688  ;;  %4708 = vrcp.f32 %v1631_v20  ;;  %v1634_v23 = vadd.f32 1.0, %v4687_v24  ;;  %1991 = vrot.lane.b32.xlu0 %v3877_v13, %s4878_s27  ;;  %v5428_v20 = vpop.permute.xlu1 %1813 }
 0x20f   : > { %v5394_v28 = vpop.eup %4690  ;;  %4710 = vpow2.f32 %v3859_v16  ;;  %1993 = vrot.lane.b32.xlu1 %v3878_v25, %s4878_s27  ;;  %v1721_v30 = vmul.f32 2.0, %v5391_v27  ;;  %v3880_v37 = vadd.f32 -1.0, %v1722_v26  ;;  %v5432_v24 = vpop.permute.xlu0 %1819 }
 0x210   : > { %v5400_v31 = vpop.eup %4692  ;;  %4712 = vrcp.f32 %v1634_v23  ;;  %v1724_v40 = vmul.f32 2.0, %v5394_v28 }
 0x211   : > { %v4695_v32 = vpop.eup %4694  ;;  %v3879_v35 = vadd.f32 -1.0, %v1721_v30  ;;  %v1723_v38 = vmul.f32 2.0, %v5400_v31 }
 0x212   : > { %v4697_v42 = vpop.eup %4696  ;;  %v1633_v44 = vadd.f32 1.0, %v4695_v32  ;;  %v3882_v58 = vadd.f32 -1.0, %v1724_v40 }
 0x213   : > { %v5406_v48 = vpop.eup %4698  ;;  %v1636_v49 = vadd.f32 1.0, %v4697_v42  ;;  %1995 = vrot.lane.b32.xlu0 %v3879_v35, %s4878_s27  ;;  %1997 = vrot.lane.b32.xlu1 %v3880_v37, %s4878_s27  ;;  %v3881_v50 = vadd.f32 -1.0, %v1723_v38  ;;  %v5442_v35 = vpop.permute.xlu1 %1817 }
 0x214   : > { %v5410_v52 = vpop.eup %4700  ;;  %4714 = vrcp.f32 %v1633_v44  ;;  %v1726_v61 = vmul.f32 2.0, %v5406_v48 }
 0x215   : > { %v4703_v53 = vpop.eup %4702  ;;  %4716 = vrcp.f32 %v1636_v49  ;;  %v1725_v60 = vmul.f32 2.0, %v5410_v52  ;;  %v5449_v49 = vpop.permute.xlu0 %1823 }
 0x216   : > { %v4705_v62 = vpop.eup %4704  ;;  %v1635_v63 = vadd.f32 1.0, %v4703_v53  ;;  %v3884_v14 = vadd.f32 -1.0, %v1726_v61 }
 0x217   : > { %v5416_v1 = vpop.eup %4706  ;;  %v1638_v56 = vadd.f32 1.0, %v4705_v62  ;;  %1999 = vrot.lane.b32.xlu0 %v3881_v50, %s4878_s27  ;;  %2001 = vrot.lane.b32.xlu1 %v3882_v58, %s4878_s27  ;;  %v3883_v8 = vadd.f32 -1.0, %v1725_v60  ;;  %v5457_v62 = vpop.permute.xlu1 %1821 }
 0x218   : > { %v5422_v6 = vpop.eup %4708  ;;  %4718 = vrcp.f32 %v1635_v63  ;;  %v1728_v15 = vmul.f32 2.0, %v5416_v1 }
 0x219   : > { %v4711_v10 = vpop.eup %4710  ;;  %4720 = vrcp.f32 %v1638_v56  ;;  %v1727_v3 = vmul.f32 2.0, %v5422_v6  ;;  %v5461_v56 = vpop.permute.xlu0 %1827 }
 0x21a   : > { %v5426_v45 = vpop.eup %4712  ;;  %v1637_v16 = vadd.f32 1.0, %v4711_v10  ;;  %v3886_v25 = vadd.f32 -1.0, %v1728_v15 }
 0x21b   : > { %2003 = vrot.lane.b32.xlu0 %v3883_v8, %s4878_s27  ;;  %2005 = vrot.lane.b32.xlu1 %v3884_v14, %s4878_s27  ;;  %v3885_v13 = vadd.f32 -1.0, %v1727_v3  ;;  %v1730_v26 = vmul.f32 2.0, %v5426_v45  ;;  %v5465_v10 = vpop.permute.xlu1 %1825 }
 0x21c   : > { %4722 = vrcp.f32 %v1637_v16 }
 0x21d   : > { %v3888_v38 = vadd.f32 -1.0, %v1730_v26  ;;  %v5467_v3 = vpop.permute.xlu0 %1831 }
 0x21e   : > { %v5435_v23 = vpop.eup %4714 }
 0x21f   : > { %v5437_v30 = vpop.eup %4716  ;;  %2007 = vrot.lane.b32.xlu0 %v3885_v13, %s4878_s27  ;;  %2009 = vrot.lane.b32.xlu1 %v3886_v25, %s4878_s27  ;;  %v1729_v32 = vmul.f32 2.0, %v5435_v23  ;;  %v5470_v15 = vpop.permute.xlu1 %1829 }
 0x220   : > { %v1732_v40 = vmul.f32 2.0, %v5437_v30 }
 0x221   : > { %v3887_v37 = vadd.f32 -1.0, %v1729_v32  ;;  %v5472_v16 = vpop.permute.xlu0 %1835 }
 0x222   : > { %v5445_v42 = vpop.eup %4718  ;;  %v3890_v60 = vadd.f32 -1.0, %v1732_v40 }
 0x223   : > { %v5447_v44 = vpop.eup %4720  ;;  %2011 = vrot.lane.b32.xlu0 %v3887_v37, %s4878_s27  ;;  %2013 = vrot.lane.b32.xlu1 %v3888_v38, %s4878_s27  ;;  %v1731_v50 = vmul.f32 2.0, %v5445_v42  ;;  %v5474_v13 = vpop.permute.xlu1 %1833 }
 0x224   : > { %v1734_v53 = vmul.f32 2.0, %v5447_v44 }
 0x225   : > { %v3889_v58 = vadd.f32 -1.0, %v1731_v50  ;;  %v5476_v25 = vpop.permute.xlu0 %1839 }
 0x226   : > { %v5455_v61 = vpop.eup %4722  ;;  %v3892_v63 = vadd.f32 -1.0, %v1734_v53  ;;  %6411 = vst [vmem:[#allocation3_spill] sm:$0xff] %v5476_v25 }
 0x227   : > { %2015 = vrot.lane.b32.xlu0 %v3889_v58, %s4878_s27  ;;  %2017 = vrot.lane.b32.xlu1 %v3890_v60, %s4878_s27  ;;  %v1733_v8 = vmul.f32 2.0, %v5455_v61  ;;  %v5478_v26 = vpop.permute.xlu1 %1837 }
 0x229   : > { %v3891_v14 = vadd.f32 -1.0, %v1733_v8  ;;  %v5480_v32 = vpop.permute.xlu0 %1843 }
 0x22a   : > { %6412 = vst [vmem:[#allocation4_spill] sm:$0xff] %v5480_v32 }
 0x22b   : > { %2021 = vrot.lane.b32.xlu0 %v3892_v63, %s4878_s27  ;;  %v5482_v37 = vpop.permute.xlu1 %1841 }
 0x22c   : > { %6413 = vst [vmem:[#allocation5_spill] sm:$0xff] %v5482_v37 }
 0x22d   : > { %v5484_v38 = vpop.permute.xlu0 %1847 }
 0x22e   : > { %6414 = vst [vmem:[#allocation6_spill] sm:$0xff] %v5484_v38 }
 0x22f   : > { %2019 = vrot.lane.b32.xlu0 %v3891_v14, %s4878_s27  ;;  %v5486_v40 = vpop.permute.xlu1 %1845 }
 0x230   : > { %6415 = vst [vmem:[#allocation7_spill] sm:$0xff] %v5486_v40 }
 0x231   : > { %v5488_v50 = vpop.permute.xlu0 %1851 }
 0x232   : > { %6416 = vst [vmem:[#allocation8_spill] sm:$0xff] %v5488_v50 }
 0x233   : > { %v5490_v53 = vpop.permute.xlu1 %1849 }
 0x234   : > { %6417 = vst [vmem:[#allocation9_spill] sm:$0xff] %v5490_v53  ;;  %v425_v53 = vld [vmem:[%s5119_s16 + $0xf8] sm:$0xff] }
 0x235   : > { %v5492_v58 = vpop.permute.xlu0 %1855 }
 0x236   : > { %6418 = vst [vmem:[#allocation10_spill] sm:$0xff] %v5492_v58 }
 0x237   : > { %v5494_v60 = vpop.permute.xlu1 %1853 }
 0x238   : > { %6419 = vst [vmem:[#allocation11_spill] sm:$0xff] %v5494_v60 }
 0x239   : > { %v5496_v63 = vpop.permute.xlu0 %1859 }
 0x23a   : > { %6420 = vst [vmem:[#allocation12_spill] sm:$0xff] %v5496_v63 }
 0x23b   : > { %v5498_v8 = vpop.permute.xlu1 %1857 }
 0x23c   : > { %6421 = vst [vmem:[#allocation13_spill] sm:$0xff] %v5498_v8 }
 0x25d   : > { %v1962_v14 = vpop.permute.xlu0 %1961 }
 0x25e   : > { %v2056_v32 = vmul.f32 %v5292_v39, %v1962_v14 }
 0x260   : > { %2121 = vrot.lane.b32.xlu1 %v2056_v32, %s4877_s17 }
 0x261   : > { %v1960_v38 = vpop.permute.xlu0 %1959  ;;  %v1966_v37 = vpop.permute.xlu1 %1965 }
 0x262   : > { %v2055_v40 = vmul.f32 %v5294_v43, %v1960_v38  ;;  %v2058_v14 = vmul.f32 %v5300_v55, %v1966_v37 }
 0x264   : > { %2119 = vrot.lane.b32.xlu1 %v2055_v40, %s4877_s17 }
 0x265   : > { %v1964_v50 = vpop.permute.xlu1 %1963 }
 0x266   : > { %v2057_v58 = vmul.f32 %v5302_v59, %v1964_v50  ;;  %v1968_v60 = vpop.permute.xlu0 %1967 }
 0x267   : > { %v2059_v32 = vmul.f32 %v5311_v12, %v1968_v60 }
 0x268   : > { %1861 = vrot.lane.b32.xlu1 %v425_v53, %s4877_s17  ;;  %2123 = vrot.lane.b32.xlu0 %v2057_v58, %s4877_s17 }
 0x269   : > { %v1970_v63 = vpop.permute.xlu1 %1969 }
 0x26a   : > { %v2060_v40 = vmul.f32 %v5309_v9, %v1970_v63 }
 0x26c   : > { %v1972_v8 = vpop.permute.xlu0 %1971  ;;  %2125 = vrot.lane.b32.xlu1 %v2058_v14, %s4877_s17  ;;  %2127 = vrot.lane.b32.xlu0 %v2059_v32, %s4877_s17 }
 0x26d   : > { %v1974_v38 = vpop.permute.xlu1 %1973  ;;  %v2061_v50 = vmul.f32 %v5326_v34, %v1972_v8 }
 0x26e   : > { %v2062_v37 = vmul.f32 %v5319_v22, %v1974_v38 }
 0x270   : > { %v1976_v25 = vpop.permute.xlu0 %1975  ;;  %2129 = vrot.lane.b32.xlu1 %v2060_v40, %s4877_s17  ;;  %2131 = vrot.lane.b32.xlu0 %v2061_v50, %s4877_s17 }
 0x271   : > { %v1978_v53 = vpop.permute.xlu1 %1977  ;;  %v2063_v58 = vmul.f32 %v5334_v51, %v1976_v25 }
 0x272   : > { %v2064_v63 = vmul.f32 %v5328_v36, %v1978_v53 }
 0x274   : > { %v1980_v60 = vpop.permute.xlu0 %1979  ;;  %2133 = vrot.lane.b32.xlu1 %v2062_v37, %s4877_s17  ;;  %2135 = vrot.lane.b32.xlu0 %v2063_v58, %s4877_s17 }
 0x275   : > { %v1982_v14 = vpop.permute.xlu1 %1981  ;;  %v2065_v8 = vmul.f32 %v5345_v7, %v1980_v60 }
 0x276   : > { %v2066_v38 = vmul.f32 %v5337_v57, %v1982_v14 }
 0x278   : > { %v1984_v32 = vpop.permute.xlu0 %1983  ;;  %2137 = vrot.lane.b32.xlu1 %v2064_v63, %s4877_s17  ;;  %2139 = vrot.lane.b32.xlu0 %v2065_v8, %s4877_s17 }
 0x279   : > { %v1986_v40 = vpop.permute.xlu1 %1985  ;;  %v2067_v25 = vmul.f32 %v5355_v21, %v1984_v32 }
 0x27a   : > { %v2068_v53 = vmul.f32 %v5347_v11, %v1986_v40 }
 0x27c   : > { %v1988_v50 = vpop.permute.xlu0 %1987  ;;  %2141 = vrot.lane.b32.xlu1 %v2066_v38, %s4877_s17  ;;  %2143 = vrot.lane.b32.xlu0 %v2067_v25, %s4877_s17 }
 0x27d   : > { %v1990_v37 = vpop.permute.xlu1 %1989  ;;  %v2069_v58 = vmul.f32 %v5366_v46, %v1988_v50 }
 0x27e   : > { %v2070_v14 = vmul.f32 %v5363_v41, %v1990_v37 }
 0x280   : > { %v1992_v60 = vpop.permute.xlu0 %1991  ;;  %2145 = vrot.lane.b32.xlu1 %v2068_v53, %s4877_s17  ;;  %2147 = vrot.lane.b32.xlu0 %v2069_v58, %s4877_s17 }
 0x281   : > { %v1994_v63 = vpop.permute.xlu1 %1993  ;;  %v2071_v8 = vmul.f32 %v5378_v4, %v1992_v60 }
 0x282   : > { %v2072_v40 = vmul.f32 %v5375_v0, %v1994_v63 }
 0x284   : > { %2149 = vrot.lane.b32.xlu1 %v2070_v14, %s4877_s17  ;;  %2151 = vrot.lane.b32.xlu0 %v2071_v8, %s4877_s17 }
 0x285   : > { %v1996_v32 = vpop.permute.xlu0 %1995  ;;  %v1998_v38 = vpop.permute.xlu1 %1997 }
 0x286   : > { %v2073_v25 = vmul.f32 %v5391_v27, %v1996_v32  ;;  %v2074_v37 = vmul.f32 %v5388_v19, %v1998_v38 }
 0x288   : > { %2153 = vrot.lane.b32.xlu1 %v2072_v40, %s4877_s17  ;;  %2155 = vrot.lane.b32.xlu0 %v2073_v25, %s4877_s17 }
 0x289   : > { %v2000_v50 = vpop.permute.xlu0 %1999  ;;  %v2002_v53 = vpop.permute.xlu1 %2001 }
 0x28a   : > { %v2075_v58 = vmul.f32 %v5400_v31, %v2000_v50  ;;  %v2076_v63 = vmul.f32 %v5394_v28, %v2002_v53 }
 0x28c   : > { %2157 = vrot.lane.b32.xlu1 %v2074_v37, %s4877_s17  ;;  %2159 = vrot.lane.b32.xlu0 %v2075_v58, %s4877_s17 }
 0x28d   : > { %v2004_v60 = vpop.permute.xlu0 %2003  ;;  %v2006_v14 = vpop.permute.xlu1 %2005 }
 0x28e   : > { %v2077_v8 = vmul.f32 %v5410_v52, %v2004_v60  ;;  %v2078_v38 = vmul.f32 %v5406_v48, %v2006_v14 }
 0x290   : > { %2161 = vrot.lane.b32.xlu1 %v2076_v63, %s4877_s17  ;;  %2163 = vrot.lane.b32.xlu0 %v2077_v8, %s4877_s17 }
 0x291   : > { %v2008_v32 = vpop.permute.xlu0 %2007  ;;  %v2010_v40 = vpop.permute.xlu1 %2009 }
 0x292   : > { %v2079_v25 = vmul.f32 %v5422_v6, %v2008_v32  ;;  %v2080_v53 = vmul.f32 %v5416_v1, %v2010_v40 }
 0x294   : > { %2165 = vrot.lane.b32.xlu1 %v2078_v38, %s4877_s17  ;;  %2167 = vrot.lane.b32.xlu0 %v2079_v25, %s4877_s17 }
 0x295   : > { %v2012_v50 = vpop.permute.xlu0 %2011  ;;  %v2014_v37 = vpop.permute.xlu1 %2013 }
 0x296   : > { %v2081_v58 = vmul.f32 %v5435_v23, %v2012_v50  ;;  %v2082_v63 = vmul.f32 %v5426_v45, %v2014_v37  ;;  %v1896_v37 = vmul.f32 %v5292_v39, %v5380_v5 }
 0x298   : > { %2169 = vrot.lane.b32.xlu1 %v2080_v53, %s4877_s17  ;;  %2171 = vrot.lane.b32.xlu0 %v2081_v58, %s4877_s17 }
 0x299   : > { %v2016_v60 = vpop.permute.xlu0 %2015  ;;  %v2018_v8 = vpop.permute.xlu1 %2017 }
 0x29a   : > { %v2083_v14 = vmul.f32 %v5445_v42, %v2016_v60  ;;  %v2084_v38 = vmul.f32 %v5437_v30, %v2018_v8  ;;  %v1895_v60 = vmul.f32 %v5294_v43, %v5351_v18  ;;  %v1897_v8 = vmul.f32 %v5302_v59, %v5368_v47 }
 0x29b   : > { %v1899_v18 = vmul.f32 %v5311_v12, %v5385_v17 }
 0x29c   : > { %2173 = vrot.lane.b32.xlu1 %v2082_v63, %s4877_s17  ;;  %2175 = vrot.lane.b32.xlu0 %v2083_v14, %s4877_s17 }
 0x29d   : > { %v2022_v32 = vpop.permute.xlu0 %2021 }
 0x29e   : > { %v2086_v25 = vmul.f32 %v5447_v44, %v2022_v32 }
 0x2a0   : > { %2177 = vrot.lane.b32.xlu1 %v2084_v38, %s4877_s17 }
 0x2a1   : > { %v2020_v40 = vpop.permute.xlu0 %2019 }
 0x2a2   : > { %v2085_v50 = vmul.f32 %v5455_v61, %v2020_v40  ;;  %v1898_v40 = vmul.f32 %v5300_v55, %v5396_v29  ;;  %v1901_v29 = vmul.f32 %v5326_v34, %v5402_v33 }
 0x2a4   : > { %2179 = vrot.lane.b32.xlu0 %v2085_v50, %s4877_s17  ;;  %2181 = vrot.lane.b32.xlu1 %v2086_v25, %s4877_s17 }
 0x2d2   : > { %v2122_v53 = vpop.permute.xlu1 %2121 }
 0x2d3   : > { %v5568_v58 = vadd.f32 %v2122_v53, %v1896_v37 }
 0x2d5   : > { %4724 = vtanh.f32 %v5568_v58 }
 0x2d6   : > { %v2120_v63 = vpop.permute.xlu1 %2119 }
 0x2d7   : > { %v5573_v14 = vadd.f32 %v2120_v63, %v1895_v60  ;;  %v1900_v60 = vmul.f32 %v5309_v9, %v5412_v54  ;;  %v1903_v54 = vmul.f32 %v5334_v51, %v5418_v2 }
 0x2d9   : > { %4726 = vtanh.f32 %v5573_v14 }
 0x2da   : > { %v5578_v32 = vpop.permute.xlu1 %1861  ;;  %v2124_v38 = vpop.permute.xlu0 %2123 }
 0x2db   : > { %v5580_v5 = vadd.f32 %v2124_v38, %v1897_v8 }
 0x2dd   : > { %4728 = vtanh.f32 %v5580_v5 }
 0x2de   : > { %v2126_v25 = vpop.permute.xlu1 %2125  ;;  %v2128_v50 = vpop.permute.xlu0 %2127 }
 0x2df   : > { %v4725_v37 = vpop.eup %4724  ;;  %v5587_v53 = vadd.f32 %v2126_v25, %v1898_v40  ;;  %v5589_v47 = vadd.f32 %v2128_v50, %v1899_v18  ;;  %v1902_v18 = vmul.f32 %v5319_v22, %v5428_v20  ;;  %v1905_v20 = vmul.f32 %v5345_v7, %v5432_v24 }
 0x2e0   : > { %2313 = vrot.lane.b32.xlu1 %v4725_v37, %s4878_s27  ;;  %v1907_v24 = vmul.f32 %v5355_v21, %v5449_v49  ;;  %v1909_v49 = vmul.f32 %v5366_v46, %v5461_v56  ;;  %v1911_v56 = vmul.f32 %v5378_v4, %v5467_v3  ;;  %v1913_v3 = vmul.f32 %v5391_v27, %v5472_v16  ;;  %v6424_v16 = vld [vmem:[#allocation3_spill] sm:$0xff] }
 0x2e1   : > { %4730 = vtanh.f32 %v5587_v53 }
 0x2e2   : > { %4732 = vtanh.f32 %v5589_v47  ;;  %v2130_v17 = vpop.permute.xlu1 %2129  ;;  %v2132_v63 = vpop.permute.xlu0 %2131 }
 0x2e3   : > { %v4727_v8 = vpop.eup %4726  ;;  %v5598_v38 = vadd.f32 %v2130_v17, %v1900_v60  ;;  %v5600_v40 = vadd.f32 %v2132_v63, %v1901_v29  ;;  %v1904_v29 = vmul.f32 %v5328_v36, %v5442_v35  ;;  %v1906_v35 = vmul.f32 %v5337_v57, %v5457_v62 }
 0x2e4   : > { %2311 = vrot.lane.b32.xlu0 %v4727_v8, %s4878_s27  ;;  %v1908_v62 = vmul.f32 %v5347_v11, %v5465_v10  ;;  %v1910_v10 = vmul.f32 %v5363_v41, %v5470_v15  ;;  %v1912_v15 = vmul.f32 %v5375_v0, %v5474_v13  ;;  %v1914_v13 = vmul.f32 %v5388_v19, %v5478_v26  ;;  %v6427_v26 = vld [vmem:[#allocation5_spill] sm:$0xff] }
 0x2e5   : > { %4734 = vtanh.f32 %v5598_v38 }
 0x2e6   : > { %4736 = vtanh.f32 %v5600_v40  ;;  %v2134_v33 = vpop.permute.xlu1 %2133  ;;  %v2136_v25 = vpop.permute.xlu0 %2135 }
 0x2e7   : > { %v4729_v50 = vpop.eup %4728  ;;  %v5609_v37 = vadd.f32 %v2134_v33, %v1902_v18  ;;  %v5611_v60 = vadd.f32 %v2136_v25, %v1903_v54 }
 0x2e8   : > { %2315 = vrot.lane.b32.xlu0 %v4729_v50, %s4878_s27 }
 0x2e9   : > { %4738 = vtanh.f32 %v5609_v37 }
 0x2ea   : > { %4740 = vtanh.f32 %v5611_v60  ;;  %v2138_v2 = vpop.permute.xlu1 %2137  ;;  %v2140_v17 = vpop.permute.xlu0 %2139 }
 0x2eb   : > { %v4731_v63 = vpop.eup %4730  ;;  %v5620_v8 = vadd.f32 %v2138_v2, %v1904_v29  ;;  %v5622_v18 = vadd.f32 %v2140_v17, %v1905_v20 }
 0x2ec   : > { %v4733_v54 = vpop.eup %4732  ;;  %2317 = vrot.lane.b32.xlu1 %v4731_v63, %s4878_s27 }
 0x2ed   : > { %4742 = vtanh.f32 %v5620_v8  ;;  %2319 = vrot.lane.b32.xlu0 %v4733_v54, %s4878_s27 }
 0x2ee   : > { %4744 = vtanh.f32 %v5622_v18  ;;  %v2142_v33 = vpop.permute.xlu1 %2141  ;;  %v2144_v25 = vpop.permute.xlu0 %2143 }
 0x2ef   : > { %v4735_v50 = vpop.eup %4734  ;;  %v5632_v29 = vadd.f32 %v2142_v33, %v1906_v35  ;;  %v5634_v20 = vadd.f32 %v2144_v25, %v1907_v24 }
 0x2f0   : > { %v4737_v2 = vpop.eup %4736  ;;  %2321 = vrot.lane.b32.xlu1 %v4735_v50, %s4878_s27 }
 0x2f1   : > { %4746 = vtanh.f32 %v5632_v29  ;;  %2323 = vrot.lane.b32.xlu0 %v4737_v2, %s4878_s27 }
 0x2f2   : > { %4748 = vtanh.f32 %v5634_v20  ;;  %v2146_v17 = vpop.permute.xlu1 %2145  ;;  %v2148_v63 = vpop.permute.xlu0 %2147 }
 0x2f3   : > { %v4739_v54 = vpop.eup %4738  ;;  %v5644_v35 = vadd.f32 %v2146_v17, %v1908_v62  ;;  %v5646_v24 = vadd.f32 %v2148_v63, %v1909_v49 }
 0x2f4   : > { %v4741_v33 = vpop.eup %4740  ;;  %2325 = vrot.lane.b32.xlu1 %v4739_v54, %s4878_s27 }
 0x2f5   : > { %4750 = vtanh.f32 %v5644_v35  ;;  %2327 = vrot.lane.b32.xlu0 %v4741_v33, %s4878_s27 }
 0x2f6   : > { %4752 = vtanh.f32 %v5646_v24  ;;  %v2150_v25 = vpop.permute.xlu1 %2149  ;;  %v2152_v50 = vpop.permute.xlu0 %2151 }
 0x2f7   : > { %v4743_v2 = vpop.eup %4742  ;;  %v5656_v62 = vadd.f32 %v2150_v25, %v1910_v10  ;;  %v5658_v49 = vadd.f32 %v2152_v50, %v1911_v56  ;;  %v1915_v50 = vmul.f32 %v5400_v31, %v6424_v16  ;;  %v6428_v16 = vld [vmem:[#allocation4_spill] sm:$0xff] }
 0x2f8   : > { %v4745_v17 = vpop.eup %4744  ;;  %2329 = vrot.lane.b32.xlu1 %v4743_v2, %s4878_s27 }
 0x2f9   : > { %6422 = vst [vmem:[#allocation14_spill] sm:$0xff] %v5658_v49  ;;  %4754 = vtanh.f32 %v5656_v62  ;;  %2331 = vrot.lane.b32.xlu0 %v4745_v17, %s4878_s27 }
 0x2fa   : > { %4756 = vtanh.f32 %v5658_v49  ;;  %v2154_v63 = vpop.permute.xlu1 %2153  ;;  %v2156_v54 = vpop.permute.xlu0 %2155  ;;  %v1917_v49 = vmul.f32 %v5410_v52, %v6428_v16  ;;  %v6432_v16 = vld [vmem:[#allocation6_spill] sm:$0xff] }
 0x2fb   : > { %v4747_v33 = vpop.eup %4746  ;;  %v5668_v10 = vadd.f32 %v2154_v63, %v1912_v15  ;;  %v5670_v56 = vadd.f32 %v2156_v54, %v1913_v3 }
 0x2fc   : > { %v4749_v25 = vpop.eup %4748  ;;  %2333 = vrot.lane.b32.xlu1 %v4747_v33, %s4878_s27  ;;  %v1916_v33 = vmul.f32 %v5394_v28, %v6427_v26  ;;  %v6431_v26 = vld [vmem:[#allocation7_spill] sm:$0xff] }
 0x2fd   : > { %6423 = vst [vmem:[#allocation15_spill] sm:$0xff] %v5670_v56  ;;  %4758 = vtanh.f32 %v5668_v10  ;;  %2335 = vrot.lane.b32.xlu0 %v4749_v25, %s4878_s27 }
 0x2fe   : > { %4760 = vtanh.f32 %v5670_v56  ;;  %v2158_v2 = vpop.permute.xlu1 %2157  ;;  %v2160_v17 = vpop.permute.xlu0 %2159  ;;  %v1918_v56 = vmul.f32 %v5406_v48, %v6431_v26  ;;  %v6435_v26 = vld [vmem:[#allocation9_spill] sm:$0xff] }
 0x2ff   : > { %v4751_v15 = vpop.eup %4750  ;;  %v5680_v3 = vadd.f32 %v2158_v2, %v1914_v13  ;;  %v5682_v63 = vadd.f32 %v2160_v17, %v1915_v50 }
 0x300   : > { %v4753_v54 = vpop.eup %4752  ;;  %2337 = vrot.lane.b32.xlu1 %v4751_v15, %s4878_s27 }
 0x301   : > { %6425 = vst [vmem:[#allocation3_spill] sm:$0xff] %v5680_v3  ;;  %6426 = vst [vmem:[#allocation16_spill] sm:$0xff] %v5682_v63  ;;  %4762 = vtanh.f32 %v5680_v3  ;;  %2339 = vrot.lane.b32.xlu0 %v4753_v54, %s4878_s27  ;;  %v1919_v3 = vmul.f32 %v5422_v6, %v6432_v16  ;;  %v6436_v16 = vld [vmem:[#allocation8_spill] sm:$0xff] }
 0x302   : > { %4764 = vtanh.f32 %v5682_v63  ;;  %v2162_v25 = vpop.permute.xlu1 %2161  ;;  %v2164_v13 = vpop.permute.xlu0 %2163  ;;  %v1920_v63 = vmul.f32 %v5416_v1, %v6435_v26  ;;  %v6438_v26 = vld [vmem:[#allocation11_spill] sm:$0xff] }
 0x303   : > { %v4755_v2 = vpop.eup %4754  ;;  %v5692_v50 = vadd.f32 %v2162_v25, %v1916_v33  ;;  %v5694_v17 = vadd.f32 %v2164_v13, %v1917_v49 }
 0x304   : > { %v4757_v15 = vpop.eup %4756  ;;  %2341 = vrot.lane.b32.xlu1 %v4755_v2, %s4878_s27 }
 0x305   : > { %6429 = vst [vmem:[#allocation5_spill] sm:$0xff] %v5692_v50  ;;  %6430 = vst [vmem:[#allocation4_spill] sm:$0xff] %v5694_v17  ;;  %4766 = vtanh.f32 %v5692_v50  ;;  %2343 = vrot.lane.b32.xlu0 %v4757_v15, %s4878_s27  ;;  %v1921_v50 = vmul.f32 %v5435_v23, %v6436_v16  ;;  %v6439_v16 = vld [vmem:[#allocation10_spill] sm:$0xff] }
 0x306   : > { %4768 = vtanh.f32 %v5694_v17  ;;  %v2166_v54 = vpop.permute.xlu1 %2165  ;;  %v2168_v33 = vpop.permute.xlu0 %2167  ;;  %v1922_v17 = vmul.f32 %v5426_v45, %v6438_v26  ;;  %v6442_v26 = vld [vmem:[#allocation13_spill] sm:$0xff] }
 0x307   : > { %v4759_v25 = vpop.eup %4758  ;;  %v5704_v49 = vadd.f32 %v2166_v54, %v1918_v56  ;;  %v5706_v13 = vadd.f32 %v2168_v33, %v1919_v3 }
 0x308   : > { %v4761_v2 = vpop.eup %4760  ;;  %2345 = vrot.lane.b32.xlu1 %v4759_v25, %s4878_s27 }
 0x309   : > { %6433 = vst [vmem:[#allocation7_spill] sm:$0xff] %v5704_v49  ;;  %6434 = vst [vmem:[#allocation6_spill] sm:$0xff] %v5706_v13  ;;  %4770 = vtanh.f32 %v5704_v49  ;;  %2347 = vrot.lane.b32.xlu0 %v4761_v2, %s4878_s27  ;;  %v1923_v49 = vmul.f32 %v5445_v42, %v6439_v16 }
 0x30a   : > { %4772 = vtanh.f32 %v5706_v13  ;;  %v2170_v15 = vpop.permute.xlu1 %2169  ;;  %v2172_v56 = vpop.permute.xlu0 %2171  ;;  %v1924_v13 = vmul.f32 %v5437_v30, %v6442_v26 }
 0x30b   : > { %v4763_v54 = vpop.eup %4762  ;;  %v5716_v3 = vadd.f32 %v2170_v15, %v1920_v63  ;;  %v5718_v33 = vadd.f32 %v2172_v56, %v1921_v50 }
 0x30c   : > { %v4765_v25 = vpop.eup %4764  ;;  %2349 = vrot.lane.b32.xlu1 %v4763_v54, %s4878_s27 }
 0x30d   : > { %6437 = vst [vmem:[#allocation9_spill] sm:$0xff] %v5718_v33  ;;  %4774 = vtanh.f32 %v5716_v3  ;;  %2351 = vrot.lane.b32.xlu0 %v4765_v25, %s4878_s27 }
 0x30e   : > { %4776 = vtanh.f32 %v5718_v33  ;;  %v2174_v2 = vpop.permute.xlu1 %2173  ;;  %v2176_v63 = vpop.permute.xlu0 %2175 }
 0x30f   : > { %v4767_v15 = vpop.eup %4766  ;;  %v5728_v50 = vadd.f32 %v2174_v2, %v1922_v17  ;;  %v5730_v56 = vadd.f32 %v2176_v63, %v1923_v49  ;;  %v1926_v49 = vmul.f32 %v5447_v44, %v5578_v32 }
 0x310   : > { %v4769_v54 = vpop.eup %4768  ;;  %2353 = vrot.lane.b32.xlu1 %v4767_v15, %s4878_s27 }
 0x311   : > { %6440 = vst [vmem:[#allocation8_spill] sm:$0xff] %v5728_v50  ;;  %6441 = vst [vmem:[#allocation11_spill] sm:$0xff] %v5730_v56  ;;  %4778 = vtanh.f32 %v5728_v50  ;;  %2355 = vrot.lane.b32.xlu0 %v4769_v54, %s4878_s27 }
 0x312   : > { %4780 = vtanh.f32 %v5730_v56  ;;  %v2178_v25 = vpop.permute.xlu1 %2177  ;;  %v6445_v56 = vld [vmem:[#allocation12_spill] sm:$0xff] }
 0x313   : > { %v4771_v16 = vpop.eup %4770  ;;  %v5738_v33 = vadd.f32 %v2178_v25, %v1924_v13  ;;  %v1925_v13 = vmul.f32 %v5455_v61, %v6445_v56  ;;  %v2439_v56 = vld [vmem:[%s6387_s3 + $0x50] sm:$0xff] }
 0x314   : > { %v4773_v17 = vpop.eup %4772  ;;  %2357 = vrot.lane.b32.xlu1 %v4771_v16, %s4878_s27 }
 0x315   : > { %6443 = vst [vmem:[#allocation10_spill] sm:$0xff] %v5738_v33  ;;  %4782 = vtanh.f32 %v5738_v33  ;;  %2359 = vrot.lane.b32.xlu0 %v4773_v17, %s4878_s27  ;;  %v2440_v17 = vld [vmem:[%s6387_s3 + $0x58] sm:$0xff] }
 0x316   : > { %v2182_v2 = vpop.permute.xlu1 %2181  ;;  %v2180_v15 = vpop.permute.xlu0 %2179 }
 0x317   : > { %v4775_v63 = vpop.eup %4774  ;;  %v5745_v54 = vadd.f32 %v2182_v2, %v1926_v49  ;;  %v5751_v25 = vadd.f32 %v2180_v15, %v1925_v13  ;;  %v2441_v49 = vld [vmem:[%s6387_s3 + $0x60] sm:$0xff]  ;;  %v2442_v15 = vld [vmem:[%s6387_s3 + $0x68] sm:$0xff] }
 0x318   : > { %v4777_v26 = vpop.eup %4776  ;;  %2361 = vrot.lane.b32.xlu1 %v4775_v63, %s4878_s27  ;;  %v4455_v63 = vpack.c.bf16 %v2440_v17, %v2439_v56 }
 0x319   : > { %6444 = vst [vmem:[#allocation13_spill] sm:$0xff] %v5745_v54  ;;  %2363 = vrot.lane.b32.xlu0 %v4777_v26, %s4878_s27  ;;  %6446 = vst [vmem:[#allocation12_spill] sm:$0xff] %v5751_v25  ;;  %4784 = vtanh.f32 %v5745_v54  ;;  %v4459_v26 = vpack.c.bf16 %v2442_v15, %v2441_v49 }
 0x31a   : > { %4786 = vtanh.f32 %v5751_v25  ;;  %4456 = vmatprep.subr.bf16.mxu0 %v4455_v63 }
 0x31b   : > { %v4779_v32 = vpop.eup %4778  ;;  %4458 = vmatpush3.bf16.msra.mxu0 %v4455_v63 }
 0x31c   : > { %v4781_v16 = vpop.eup %4780  ;;  %2365 = vrot.lane.b32.xlu1 %v4779_v32, %s4878_s27  ;;  %4460 = vmatprep.subr.bf16.mxu0 %v4459_v26 }
 0x31d   : > { %2367 = vrot.lane.b32.xlu0 %v4781_v16, %s4878_s27 }
 0x31f   : > { %v4783_v2 = vpop.eup %4782  ;;  %4462 = vmatpush3.bf16.msra.mxu0 %v4459_v26 }
 0x320   : > { %2369 = vrot.lane.b32.xlu1 %v4783_v2, %s4878_s27 }
 0x323   : > { %v4785_v13 = vpop.eup %4784 }
 0x324   : > { %2373 = vrot.lane.b32.xlu0 %v4785_v13, %s4878_s27  ;;  %v4787_v32 = vpop.eup %4786 }
 0x328   : > { %2371 = vrot.lane.b32.xlu0 %v4787_v32, %s4878_s27 }
 0x352   : > { %v2314_v17 = vpop.permute.xlu1 %2313 }
 0x353   : > { %v2408_v2 = vmul.f32 %v5292_v39, %v2314_v17 }
 0x356   : > { %v2312_v16 = vpop.permute.xlu0 %2311 }
 0x357   : > { %v2407_v56 = vmul.f32 %v5294_v43, %v2312_v16 }
 0x359   : > { %2480 = vrot.lane.b32.xlu1 %v2407_v56, %s4877_s17 }
 0x35a   : > { %v2316_v25 = vpop.permute.xlu0 %2315 }
 0x35b   : > { %v2409_v49 = vmul.f32 %v5302_v59, %v2316_v25 }
 0x35d   : > { %2482 = vrot.lane.b32.xlu1 %v2408_v2, %s4877_s17  ;;  %2484 = vrot.lane.b32.xlu0 %v2409_v49, %s4877_s17 }
 0x35e   : > { %v2318_v63 = vpop.permute.xlu1 %2317 }
 0x35f   : > { %v2410_v15 = vmul.f32 %v5300_v55, %v2318_v63  ;;  %v2320_v26 = vpop.permute.xlu0 %2319 }
 0x360   : > { %v2411_v13 = vmul.f32 %v5311_v12, %v2320_v26 }
 0x361   : > { %2486 = vrot.lane.b32.xlu1 %v2410_v15, %s4877_s17 }
 0x362   : > { %2488 = vrot.lane.b32.xlu0 %v2411_v13, %s4877_s17  ;;  %v2322_v43 = vpop.permute.xlu1 %2321 }
 0x363   : > { %v2412_v32 = vmul.f32 %v5309_v9, %v2322_v43  ;;  %v2324_v39 = vpop.permute.xlu0 %2323 }
 0x364   : > { %v2413_v59 = vmul.f32 %v5326_v34, %v2324_v39 }
 0x365   : > { %2490 = vrot.lane.b32.xlu1 %v2412_v32, %s4877_s17 }
 0x366   : > { %2492 = vrot.lane.b32.xlu0 %v2413_v59, %s4877_s17  ;;  %v2326_v25 = vpop.permute.xlu1 %2325 }
 0x367   : > { %v2414_v55 = vmul.f32 %v5319_v22, %v2326_v25  ;;  %v2328_v16 = vpop.permute.xlu0 %2327 }
 0x368   : > { %v2415_v12 = vmul.f32 %v5334_v51, %v2328_v16 }
 0x369   : > { %2494 = vrot.lane.b32.xlu1 %v2414_v55, %s4877_s17 }
 0x36a   : > { %2496 = vrot.lane.b32.xlu0 %v2415_v12, %s4877_s17  ;;  %v2330_v56 = vpop.permute.xlu1 %2329 }
 0x36b   : > { %v2416_v9 = vmul.f32 %v5328_v36, %v2330_v56  ;;  %v2332_v17 = vpop.permute.xlu0 %2331 }
 0x36c   : > { %v2417_v34 = vmul.f32 %v5345_v7, %v2332_v17 }
 0x36d   : > { %2498 = vrot.lane.b32.xlu1 %v2416_v9, %s4877_s17 }
 0x36e   : > { %2500 = vrot.lane.b32.xlu0 %v2417_v34, %s4877_s17  ;;  %v2334_v2 = vpop.permute.xlu1 %2333 }
 0x36f   : > { %v2418_v22 = vmul.f32 %v5337_v57, %v2334_v2  ;;  %v2336_v49 = vpop.permute.xlu0 %2335 }
 0x370   : > { %v2419_v51 = vmul.f32 %v5355_v21, %v2336_v49 }
 0x371   : > { %2502 = vrot.lane.b32.xlu1 %v2418_v22, %s4877_s17 }
 0x372   : > { %2504 = vrot.lane.b32.xlu0 %v2419_v51, %s4877_s17  ;;  %v2338_v63 = vpop.permute.xlu1 %2337 }
 0x373   : > { %v2420_v36 = vmul.f32 %v5347_v11, %v2338_v63  ;;  %v2340_v15 = vpop.permute.xlu0 %2339 }
 0x374   : > { %v2421_v7 = vmul.f32 %v5366_v46, %v2340_v15  ;;  %v2900_v15 = vld [vmem:[%s6387_s3 + $0x88] sm:$0xff] }
 0x375   : > { %2506 = vrot.lane.b32.xlu1 %v2420_v36, %s4877_s17 }
 0x376   : > { %2508 = vrot.lane.b32.xlu0 %v2421_v7, %s4877_s17  ;;  %v2342_v26 = vpop.permute.xlu1 %2341 }
 0x377   : > { %v2422_v57 = vmul.f32 %v5363_v41, %v2342_v26  ;;  %v2344_v13 = vpop.permute.xlu0 %2343 }
 0x378   : > { %v2423_v21 = vmul.f32 %v5378_v4, %v2344_v13 }
 0x379   : > { %2510 = vrot.lane.b32.xlu1 %v2422_v57, %s4877_s17 }
 0x37a   : > { %2512 = vrot.lane.b32.xlu0 %v2423_v21, %s4877_s17  ;;  %v2346_v43 = vpop.permute.xlu1 %2345 }
 0x37b   : > { %v2424_v11 = vmul.f32 %v5375_v0, %v2346_v43  ;;  %v2348_v32 = vpop.permute.xlu0 %2347 }
 0x37c   : > { %v2425_v46 = vmul.f32 %v5391_v27, %v2348_v32 }
 0x37d   : > { %2514 = vrot.lane.b32.xlu1 %v2424_v11, %s4877_s17 }
 0x37e   : > { %2516 = vrot.lane.b32.xlu0 %v2425_v46, %s4877_s17  ;;  %v2350_v39 = vpop.permute.xlu1 %2349 }
 0x37f   : > { %v2426_v41 = vmul.f32 %v5388_v19, %v2350_v39  ;;  %v2352_v59 = vpop.permute.xlu0 %2351 }
 0x380   : > { %v2427_v4 = vmul.f32 %v5400_v31, %v2352_v59 }
 0x381   : > { %2518 = vrot.lane.b32.xlu1 %v2426_v41, %s4877_s17 }
 0x382   : > { %2520 = vrot.lane.b32.xlu0 %v2427_v4, %s4877_s17  ;;  %v2354_v25 = vpop.permute.xlu1 %2353 }
 0x383   : > { %v2428_v0 = vmul.f32 %v5394_v28, %v2354_v25  ;;  %v2356_v55 = vpop.permute.xlu0 %2355 }
 0x384   : > { %v2429_v27 = vmul.f32 %v5410_v52, %v2356_v55 }
 0x385   : > { %2522 = vrot.lane.b32.xlu1 %v2428_v0, %s4877_s17 }
 0x386   : > { %2524 = vrot.lane.b32.xlu0 %v2429_v27, %s4877_s17  ;;  %v2358_v16 = vpop.permute.xlu1 %2357 }
 0x387   : > { %v2430_v19 = vmul.f32 %v5406_v48, %v2358_v16  ;;  %v2360_v12 = vpop.permute.xlu0 %2359 }
 0x388   : > { %v2431_v31 = vmul.f32 %v5422_v6, %v2360_v12 }
 0x389   : > { %2526 = vrot.lane.b32.xlu1 %v2430_v19, %s4877_s17 }
 0x38a   : > { %2528 = vrot.lane.b32.xlu0 %v2431_v31, %s4877_s17  ;;  %v2362_v56 = vpop.permute.xlu1 %2361 }
 0x38b   : > { %v2432_v28 = vmul.f32 %v5416_v1, %v2362_v56  ;;  %v2364_v9 = vpop.permute.xlu0 %2363  ;;  %v2897_v1 = vld [vmem:[%s6387_s3 + $0x70] sm:$0xff] }
 0x38c   : > { %v2433_v52 = vmul.f32 %v5435_v23, %v2364_v9  ;;  %v2898_v23 = vld [vmem:[%s6387_s3 + $0x78] sm:$0xff] }
 0x38d   : > { %2530 = vrot.lane.b32.xlu1 %v2432_v28, %s4877_s17  ;;  %v4463_v49 = vpack.c.bf16 %v2898_v23, %v2897_v1  ;;  %v5979_v1 = vld [vmem:[%s6388_s4 + $0x2] ss:$0 sm:$0xff] }
 0x38e   : > { %2532 = vrot.lane.b32.xlu0 %v2433_v52, %s4877_s17  ;;  %v2366_v17 = vpop.permute.xlu1 %2365 }
 0x38f   : > { %v2434_v48 = vmul.f32 %v5426_v45, %v2366_v17  ;;  %v2368_v34 = vpop.permute.xlu0 %2367  ;;  %4464 = vmatprep.subr.bf16.mxu0 %v4463_v49 }
 0x390   : > { %v2435_v6 = vmul.f32 %v5445_v42, %v2368_v34 }
 0x391   : > { %2534 = vrot.lane.b32.xlu1 %v2434_v48, %s4877_s17 }
 0x392   : > { %2536 = vrot.lane.b32.xlu0 %v2435_v6, %s4877_s17  ;;  %v2370_v2 = vpop.permute.xlu1 %2369 }
 0x393   : > { %v2436_v22 = vmul.f32 %v5437_v30, %v2370_v2  ;;  %v2899_v30 = vld [vmem:[%s6387_s3 + $0x80] sm:$0xff] }
 0x395   : > { %2538 = vrot.lane.b32.xlu1 %v2436_v22, %s4877_s17 }
 0x396   : > { %v2374_v45 = vpop.permute.xlu0 %2373 }
 0x397   : > { %v2438_v42 = vmul.f32 %v5447_v44, %v2374_v45  ;;  %v4467_v44 = vpack.c.bf16 %v2900_v15, %v2899_v30 }
 0x399   : > { %2542 = vrot.lane.b32.xlu1 %v2438_v42, %s4877_s17 }
 0x39a   : > { %v2372_v51 = vpop.permute.xlu0 %2371 }
 0x39b   : > { %v2437_v63 = vmul.f32 %v5455_v61, %v2372_v51 }
 0x39d   : > { %2540 = vrot.lane.b32.xlu0 %v2437_v63, %s4877_s17 }
 0x3cb   : > { %v5842_v36 = vpop.permute.xlu1 %2480 }
 0x3cc   : > { %4329 = vmatprep.mubr.msk.f32.mxu0 %vm831_vm4, %v5842_v36 }
 0x3cf   : > { %v5852_v7 = vpop.permute.xlu1 %2482  ;;  %v5854_v26 = vpop.permute.xlu0 %2484 }
 0x3d0   : > { %4330 = vmatmul.mubr.msk.f32.vlgmr.msra.gmra.mrb[16].mxu0 %vm831_vm4, %v5852_v7 }
 0x3d1   : > { %4332 = vmatprep.mubr.msk.f32.mxu0 %vm831_vm4, %v5854_v26  ;;  %4466 = vmatpush3.bf16.msra.mxu0 %v4463_v49 }
 0x3d2   : > { %4468 = vmatprep.subr.bf16.mxu0 %v4467_v44 }
 0x3d3   : > { %v5860_v61 = vpop.permute.xlu1 %2486 }
 0x3d4   : > { %v5862_v57 = vpop.permute.xlu0 %2488  ;;  %4333 = vmatmul.mubr.msk.f32.gmra.mrb[18].mxu0 %vm831_vm4, %v5860_v61 }
 0x3d5   : > { %4335 = vmatprep.mubr.msk.f32.mxu0 %vm831_vm4, %v5862_v57  ;;  %4470 = vmatpush3.bf16.msra.mxu0 %v4467_v44 }
 0x3d7   : > { %v5868_v13 = vpop.permute.xlu1 %2490 }
 0x3d8   : > { %v5870_v21 = vpop.permute.xlu0 %2492  ;;  %4336 = vmatmul.mubr.msk.f32.gmra.mrb[20].mxu0 %vm831_vm4, %v5868_v13 }
 0x3d9   : > { %4338 = vmatprep.mubr.msk.f32.mxu0 %vm831_vm4, %v5870_v21 }
 0x3db   : > { %v5876_v43 = vpop.permute.xlu1 %2494 }
 0x3dc   : > { %v5878_v11 = vpop.permute.xlu0 %2496  ;;  %4339 = vmatmul.mubr.msk.f32.gmra.mrb[22].mxu0 %vm831_vm4, %v5876_v43 }
 0x3dd   : > { %4341 = vmatprep.mubr.msk.f32.mxu0 %vm831_vm4, %v5878_v11 }
 0x3df   : > { %v5884_v32 = vpop.permute.xlu1 %2498 }
 0x3e0   : > { %v5886_v46 = vpop.permute.xlu0 %2500  ;;  %4342 = vmatmul.mubr.msk.f32.gmra.mrb[24].mxu0 %vm831_vm4, %v5884_v32 }
 0x3e1   : > { %4344 = vmatprep.mubr.msk.f32.mxu0 %vm831_vm4, %v5886_v46 }
 0x3e3   : > { %v5892_v39 = vpop.permute.xlu1 %2502 }
 0x3e4   : > { %v5894_v41 = vpop.permute.xlu0 %2504  ;;  %4345 = vmatmul.mubr.msk.f32.gmra.mrb[26].mxu0 %vm831_vm4, %v5892_v39 }
 0x3e5   : > { %4347 = vmatprep.mubr.msk.f32.mxu0 %vm831_vm4, %v5894_v41 }
 0x3e7   : > { %v5900_v59 = vpop.permute.xlu1 %2506 }
 0x3e8   : > { %v5902_v4 = vpop.permute.xlu0 %2508  ;;  %4348 = vmatmul.mubr.msk.f32.gmra.mrb[28].mxu0 %vm831_vm4, %v5900_v59 }
 0x3e9   : > { %4350 = vmatprep.mubr.msk.f32.mxu0 %vm831_vm4, %v5902_v4 }
 0x3eb   : > { %v5908_v25 = vpop.permute.xlu1 %2510 }
 0x3ec   : > { %v5910_v0 = vpop.permute.xlu0 %2512  ;;  %4351 = vmatmul.mubr.msk.f32.gmra.mrb[30].mxu0 %vm831_vm4, %v5908_v25 }
 0x3ed   : > { %4353 = vmatprep.mubr.msk.f32.mxu0 %vm831_vm4, %v5910_v0 }
 0x3ef   : > { %v5916_v55 = vpop.permute.xlu1 %2514 }
 0x3f0   : > { %v5918_v27 = vpop.permute.xlu0 %2516  ;;  %4354 = vmatmul.mubr.msk.f32.gmra.mrb[32].mxu0 %vm831_vm4, %v5916_v55 }
 0x3f1   : > { %4356 = vmatprep.mubr.msk.f32.mxu0 %vm831_vm4, %v5918_v27 }
 0x3f3   : > { %v5924_v16 = vpop.permute.xlu1 %2518 }
 0x3f4   : > { %v5926_v19 = vpop.permute.xlu0 %2520  ;;  %4357 = vmatmul.mubr.msk.f32.gmra.mrb[34].mxu0 %vm831_vm4, %v5924_v16 }
 0x3f5   : > { %4359 = vmatprep.mubr.msk.f32.mxu0 %vm831_vm4, %v5926_v19 }
 0x3f7   : > { %v5932_v12 = vpop.permute.xlu1 %2522 }
 0x3f8   : > { %v5934_v31 = vpop.permute.xlu0 %2524  ;;  %4360 = vmatmul.mubr.msk.f32.gmra.mrb[36].mxu0 %vm831_vm4, %v5932_v12 }
 0x3f9   : > { %4362 = vmatprep.mubr.msk.f32.mxu0 %vm831_vm4, %v5934_v31 }
 0x3fb   : > { %v5940_v56 = vpop.permute.xlu1 %2526 }
 0x3fc   : > { %v5942_v28 = vpop.permute.xlu0 %2528  ;;  %4363 = vmatmul.mubr.msk.f32.gmra.mrb[38].mxu0 %vm831_vm4, %v5940_v56 }
 0x3fd   : > { %4365 = vmatprep.mubr.msk.f32.mxu0 %vm831_vm4, %v5942_v28 }
 0x3ff   : > { %v5948_v9 = vpop.permute.xlu1 %2530 }
 0x400   : > { %v5950_v52 = vpop.permute.xlu0 %2532  ;;  %4366 = vmatmul.mubr.msk.f32.gmra.mrb[40].mxu0 %vm831_vm4, %v5948_v9 }
 0x401   : > { %6447 = vst [vmem:[#allocation17_spill] sm:$0xff] %v5950_v52  ;;  %4368 = vmatprep.mubr.msk.f32.mxu0 %vm831_vm4, %v5950_v52 }
 0x403   : > { %v5956_v17 = vpop.permute.xlu1 %2534 }
 0x404   : > { %6448 = vst [vmem:[#allocation18_spill] sm:$0xff] %v5956_v17  ;;  %v5958_v48 = vpop.permute.xlu0 %2536  ;;  %4369 = vmatmul.mubr.msk.f32.gmra.mrb[42].mxu0 %vm831_vm4, %v5956_v17 }
 0x405   : > { %6449 = vst [vmem:[#allocation19_spill] sm:$0xff] %v5958_v48  ;;  %4371 = vmatprep.mubr.msk.f32.mxu0 %vm831_vm4, %v5958_v48 }
 0x407   : > { %v5964_v34 = vpop.permute.xlu1 %2538 }
 0x408   : > { %6450 = vst [vmem:[#allocation20_spill] sm:$0xff] %v5964_v34  ;;  %4372 = vmatmul.mubr.msk.f32.gmra.mrb[44].mxu0 %vm831_vm4, %v5964_v34 }
 0x40b   : > { %v5970_v2 = vpop.permute.xlu1 %2542 }
 0x40c   : > { %6452 = vst [vmem:[#allocation22_spill] sm:$0xff] %v5970_v2 }
 0x40f   : > { %v5968_v6 = vpop.permute.xlu0 %2540 }
 0x410   : > { %6451 = vst [vmem:[#allocation21_spill] sm:$0xff] %v5968_v6  ;;  %4374 = vmatprep.mubr.msk.f32.mxu0 %vm831_vm4, %v5968_v6 }
 0x411   : > { %4375 = vmatmul.mubr.msk.f32.gmra.mrb[46].mxu0 %vm831_vm4, %v5970_v2 }
 0x4a3   : > { %v4331_v23 = vpop.f32.mrb[16].mxu0 }
 0x4a4   : > { %v2680_v22 = vadd.f32 %v4331_v23, %v5979_v1  ;;  %v2674_v49 = vpop.f32.mrb[17].mxu0 }
 0x4a5   : > { %v2675_v45 = vadd.f32 %v5979_v1, %v2674_v49 }
 0x4a6   : > { %v2834_v42 = vmul.f32 0.01, %v2680_v22 }
 0x4a7   : > { %v2833_v51 = vmul.f32 0.01, %v2675_v45  ;;  %v4334_v63 = vpop.f32.mrb[18].mxu0 }
 0x4a8   : > { %v2690_v30 = vadd.f32 %v4334_v63, %v5979_v1  ;;  %v2684_v15 = vpop.f32.mrb[19].mxu0  ;;  %v2866_v2 = vmax.f32 %v2680_v22, %v2834_v42 }
 0x4a9   : > { %v2865_v44 = vmax.f32 %v2675_v45, %v2833_v51  ;;  %v2685_v6 = vadd.f32 %v5979_v1, %v2684_v15 }
 0x4aa   : > { %v2836_v54 = vmul.f32 0.01, %v2690_v30 }
 0x4ab   : > { %v2835_v48 = vmul.f32 0.01, %v2685_v6  ;;  %v4337_v34 = vpop.f32.mrb[20].mxu0  ;;  %4385 = vmatprep.mubr.msk.f32.mxu0 %vm831_vm4, %v2865_v44 }
 0x4ac   : > { %v2700_v23 = vadd.f32 %v4337_v34, %v5979_v1  ;;  %v2694_v33 = vpop.f32.mrb[21].mxu0  ;;  %4386 = vmatmul.mubr.msk.f32.vlgmr.msra.gmra.mrb[48].mxu0 %vm831_vm4, %v2866_v2  ;;  %v2868_v17 = vmax.f32 %v2690_v30, %v2836_v54 }
 0x4ad   : > { %v2867_v49 = vmax.f32 %v2685_v6, %v2835_v48  ;;  %v2695_v52 = vadd.f32 %v5979_v1, %v2694_v33 }
 0x4ae   : > { %v2838_v63 = vmul.f32 0.01, %v2700_v23 }
 0x4af   : > { %v2837_v50 = vmul.f32 0.01, %v2695_v52  ;;  %v4340_v45 = vpop.f32.mrb[22].mxu0  ;;  %4388 = vmatprep.mubr.msk.f32.mxu0 %vm831_vm4, %v2867_v49 }
 0x4b0   : > { %v2710_v22 = vadd.f32 %v4340_v45, %v5979_v1  ;;  %v2704_v42 = vpop.f32.mrb[23].mxu0  ;;  %4389 = vmatmul.mubr.msk.f32.gmra.mrb[50].mxu0 %vm831_vm4, %v2868_v17  ;;  %v2870_v15 = vmax.f32 %v2700_v23, %v2838_v63 }
 0x4b1   : > { %v2869_v51 = vmax.f32 %v2695_v52, %v2837_v50  ;;  %v2705_v34 = vadd.f32 %v5979_v1, %v2704_v42 }
 0x4b2   : > { %v2840_v44 = vmul.f32 0.01, %v2710_v22 }
 0x4b3   : > { %v2839_v2 = vmul.f32 0.01, %v2705_v34  ;;  %v4343_v48 = vpop.f32.mrb[24].mxu0  ;;  %4391 = vmatprep.mubr.msk.f32.mxu0 %vm831_vm4, %v2869_v51 }
 0x4b4   : > { %v2720_v33 = vadd.f32 %v4343_v48, %v5979_v1  ;;  %v2714_v54 = vpop.f32.mrb[25].mxu0  ;;  %4392 = vmatmul.mubr.msk.f32.gmra.mrb[52].mxu0 %vm831_vm4, %v2870_v15  ;;  %v2872_v49 = vmax.f32 %v2710_v22, %v2840_v44 }
 0x4b5   : > { %v2871_v6 = vmax.f32 %v2705_v34, %v2839_v2  ;;  %v2715_v30 = vadd.f32 %v5979_v1, %v2714_v54 }
 0x4b6   : > { %v2842_v45 = vmul.f32 0.01, %v2720_v33 }
 0x4b7   : > { %v2841_v17 = vmul.f32 0.01, %v2715_v30  ;;  %v4346_v50 = vpop.f32.mrb[26].mxu0  ;;  %4394 = vmatprep.mubr.msk.f32.mxu0 %vm831_vm4, %v2871_v6 }
 0x4b8   : > { %v2730_v52 = vadd.f32 %v4346_v50, %v5979_v1  ;;  %v2724_v23 = vpop.f32.mrb[27].mxu0  ;;  %4395 = vmatmul.mubr.msk.f32.gmra.mrb[54].mxu0 %vm831_vm4, %v2872_v49  ;;  %v2874_v51 = vmax.f32 %v2720_v33, %v2842_v45 }
 0x4b9   : > { %v2873_v63 = vmax.f32 %v2715_v30, %v2841_v17  ;;  %v2725_v42 = vadd.f32 %v5979_v1, %v2724_v23 }
 0x4ba   : > { %v2844_v48 = vmul.f32 0.01, %v2730_v52 }
 0x4bb   : > { %v2843_v15 = vmul.f32 0.01, %v2725_v42  ;;  %v4349_v34 = vpop.f32.mrb[28].mxu0  ;;  %4397 = vmatprep.mubr.msk.f32.mxu0 %vm831_vm4, %v2873_v63 }
 0x4bc   : > { %v2740_v22 = vadd.f32 %v4349_v34, %v5979_v1  ;;  %v2734_v44 = vpop.f32.mrb[29].mxu0  ;;  %4398 = vmatmul.mubr.msk.f32.gmra.mrb[56].mxu0 %vm831_vm4, %v2874_v51  ;;  %v2876_v6 = vmax.f32 %v2730_v52, %v2844_v48 }
 0x4bd   : > { %v2875_v2 = vmax.f32 %v2725_v42, %v2843_v15  ;;  %v2735_v54 = vadd.f32 %v5979_v1, %v2734_v44 }
 0x4be   : > { %v2846_v50 = vmul.f32 0.01, %v2740_v22 }
 0x4bf   : > { %v2845_v49 = vmul.f32 0.01, %v2735_v54  ;;  %v4352_v30 = vpop.f32.mrb[30].mxu0  ;;  %4400 = vmatprep.mubr.msk.f32.mxu0 %vm831_vm4, %v2875_v2 }
 0x4c0   : > { %v2750_v33 = vadd.f32 %v4352_v30, %v5979_v1  ;;  %v2744_v45 = vpop.f32.mrb[31].mxu0  ;;  %4401 = vmatmul.mubr.msk.f32.gmra.mrb[58].mxu0 %vm831_vm4, %v2876_v6  ;;  %v2878_v63 = vmax.f32 %v2740_v22, %v2846_v50 }
 0x4c1   : > { %v2877_v17 = vmax.f32 %v2735_v54, %v2845_v49  ;;  %v2745_v23 = vadd.f32 %v5979_v1, %v2744_v45 }
 0x4c2   : > { %v2848_v34 = vmul.f32 0.01, %v2750_v33 }
 0x4c3   : > { %v2847_v51 = vmul.f32 0.01, %v2745_v23  ;;  %v4355_v42 = vpop.f32.mrb[32].mxu0  ;;  %4403 = vmatprep.mubr.msk.f32.mxu0 %vm831_vm4, %v2877_v17 }
 0x4c4   : > { %v2760_v52 = vadd.f32 %v4355_v42, %v5979_v1  ;;  %v2754_v48 = vpop.f32.mrb[33].mxu0  ;;  %4404 = vmatmul.mubr.msk.f32.gmra.mrb[60].mxu0 %vm831_vm4, %v2878_v63  ;;  %v2880_v2 = vmax.f32 %v2750_v33, %v2848_v34 }
 0x4c5   : > { %v2879_v15 = vmax.f32 %v2745_v23, %v2847_v51  ;;  %v2755_v44 = vadd.f32 %v5979_v1, %v2754_v48 }
 0x4c6   : > { %v2850_v30 = vmul.f32 0.01, %v2760_v52 }
 0x4c7   : > { %v2849_v6 = vmul.f32 0.01, %v2755_v44  ;;  %v4358_v54 = vpop.f32.mrb[34].mxu0  ;;  %4406 = vmatprep.mubr.msk.f32.mxu0 %vm831_vm4, %v2879_v15 }
 0x4c8   : > { %v2770_v22 = vadd.f32 %v4358_v54, %v5979_v1  ;;  %v2764_v50 = vpop.f32.mrb[35].mxu0  ;;  %4407 = vmatmul.mubr.msk.f32.gmra.mrb[62].mxu0 %vm831_vm4, %v2880_v2  ;;  %v2882_v17 = vmax.f32 %v2760_v52, %v2850_v30 }
 0x4c9   : > { %v2881_v49 = vmax.f32 %v2755_v44, %v2849_v6  ;;  %v2765_v45 = vadd.f32 %v5979_v1, %v2764_v50 }
 0x4ca   : > { %v2852_v42 = vmul.f32 0.01, %v2770_v22 }
 0x4cb   : > { %v2851_v63 = vmul.f32 0.01, %v2765_v45  ;;  %v4361_v23 = vpop.f32.mrb[36].mxu0  ;;  %4409 = vmatprep.mubr.msk.f32.mxu0 %vm831_vm4, %v2881_v49 }
 0x4cc   : > { %v2780_v33 = vadd.f32 %v4361_v23, %v5979_v1  ;;  %v2774_v34 = vpop.f32.mrb[37].mxu0  ;;  %4410 = vmatmul.mubr.msk.f32.gmra.mrb[64].mxu0 %vm831_vm4, %v2882_v17  ;;  %v2884_v15 = vmax.f32 %v2770_v22, %v2852_v42 }
 0x4cd   : > { %v2883_v51 = vmax.f32 %v2765_v45, %v2851_v63  ;;  %v2775_v48 = vadd.f32 %v5979_v1, %v2774_v34 }
 0x4ce   : > { %v2854_v54 = vmul.f32 0.01, %v2780_v33 }
 0x4cf   : > { %v2853_v2 = vmul.f32 0.01, %v2775_v48  ;;  %v4364_v44 = vpop.f32.mrb[38].mxu0  ;;  %4412 = vmatprep.mubr.msk.f32.mxu0 %vm831_vm4, %v2883_v51 }
 0x4d0   : > { %v2790_v52 = vadd.f32 %v4364_v44, %v5979_v1  ;;  %v2784_v30 = vpop.f32.mrb[39].mxu0  ;;  %4413 = vmatmul.mubr.msk.f32.gmra.mrb[66].mxu0 %vm831_vm4, %v2884_v15  ;;  %v2886_v49 = vmax.f32 %v2780_v33, %v2854_v54 }
 0x4d1   : > { %v2885_v6 = vmax.f32 %v2775_v48, %v2853_v2  ;;  %v2785_v50 = vadd.f32 %v5979_v1, %v2784_v30 }
 0x4d2   : > { %v2856_v23 = vmul.f32 0.01, %v2790_v52 }
 0x4d3   : > { %v2855_v17 = vmul.f32 0.01, %v2785_v50  ;;  %v4367_v45 = vpop.f32.mrb[40].mxu0  ;;  %4415 = vmatprep.mubr.msk.f32.mxu0 %vm831_vm4, %v2885_v6 }
 0x4d4   : > { %v2800_v22 = vadd.f32 %v4367_v45, %v5979_v1  ;;  %v2794_v42 = vpop.f32.mrb[41].mxu0  ;;  %4416 = vmatmul.mubr.msk.f32.gmra.mrb[68].mxu0 %vm831_vm4, %v2886_v49  ;;  %v2888_v51 = vmax.f32 %v2790_v52, %v2856_v23 }
 0x4d5   : > { %v2887_v63 = vmax.f32 %v2785_v50, %v2855_v17  ;;  %v2795_v34 = vadd.f32 %v5979_v1, %v2794_v42 }
 0x4d6   : > { %v2858_v44 = vmul.f32 0.01, %v2800_v22 }
 0x4d7   : > { %v2857_v15 = vmul.f32 0.01, %v2795_v34  ;;  %v4370_v48 = vpop.f32.mrb[42].mxu0  ;;  %4418 = vmatprep.mubr.msk.f32.mxu0 %vm831_vm4, %v2887_v63 }
 0x4d8   : > { %v2810_v33 = vadd.f32 %v4370_v48, %v5979_v1  ;;  %v2804_v54 = vpop.f32.mrb[43].mxu0  ;;  %4419 = vmatmul.mubr.msk.f32.gmra.mrb[70].mxu0 %vm831_vm4, %v2888_v51  ;;  %v2890_v6 = vmax.f32 %v2800_v22, %v2858_v44 }
 0x4d9   : > { %v2889_v2 = vmax.f32 %v2795_v34, %v2857_v15  ;;  %v2805_v30 = vadd.f32 %v5979_v1, %v2804_v54 }
 0x4da   : > { %v2860_v45 = vmul.f32 0.01, %v2810_v33 }
 0x4db   : > { %v2859_v49 = vmul.f32 0.01, %v2805_v30  ;;  %v4373_v50 = vpop.f32.mrb[44].mxu0  ;;  %4421 = vmatprep.mubr.msk.f32.mxu0 %vm831_vm4, %v2889_v2 }
 0x4dc   : > { %v2820_v52 = vadd.f32 %v4373_v50, %v5979_v1  ;;  %v2814_v23 = vpop.f32.mrb[45].mxu0  ;;  %4422 = vmatmul.mubr.msk.f32.gmra.mrb[72].mxu0 %vm831_vm4, %v2890_v6  ;;  %v2892_v63 = vmax.f32 %v2810_v33, %v2860_v45 }
 0x4dd   : > { %v2891_v17 = vmax.f32 %v2805_v30, %v2859_v49  ;;  %v2815_v42 = vadd.f32 %v5979_v1, %v2814_v23  ;;  %v6049_v49 = vld [vmem:[%s6388_s4 + $0x3] ss:$0 sm:$0xff]  ;;  %v3260_v23 = vsel %vm831_vm4, %v5852_v7, %v5568_v58 }
 0x4de   : > { %v2862_v48 = vmul.f32 0.01, %v2820_v52 }
 0x4df   : > { %v2861_v51 = vmul.f32 0.01, %v2815_v42  ;;  %4424 = vmatprep.mubr.msk.f32.mxu0 %vm831_vm4, %v2891_v17 }
 0x4e0   : > { %4425 = vmatmul.mubr.msk.f32.gmra.mrb[74].mxu0 %vm831_vm4, %v2892_v63  ;;  %v2894_v34 = vmax.f32 %v2820_v52, %v2862_v48 }
 0x4e1   : > { %v2893_v22 = vmax.f32 %v2815_v42, %v2861_v51  ;;  %v3259_v42 = vsel %vm831_vm4, %v5842_v36, %v5573_v14  ;;  %v3262_v14 = vsel %vm831_vm4, %v5860_v61, %v5587_v53  ;;  %v3264_v53 = vsel %vm831_vm4, %v5868_v13, %v5598_v38 }
 0x4e2   : > { %v3266_v38 = vsel %vm831_vm4, %v5876_v43, %v5609_v37  ;;  %v3268_v37 = vsel %vm831_vm4, %v5884_v32, %v5620_v8  ;;  %v3270_v8 = vsel %vm831_vm4, %v5892_v39, %v5632_v29  ;;  %v3272_v29 = vsel %vm831_vm4, %v5900_v59, %v5644_v35 }
 0x4e3   : > { %4427 = vmatprep.mubr.msk.f32.mxu0 %vm831_vm4, %v2893_v22  ;;  %v3261_v22 = vsel %vm831_vm4, %v5854_v26, %v5580_v5  ;;  %v3263_v5 = vsel %vm831_vm4, %v5862_v57, %v5589_v47  ;;  %v3265_v47 = vsel %vm831_vm4, %v5870_v21, %v5600_v40  ;;  %v3267_v40 = vsel %vm831_vm4, %v5878_v11, %v5611_v60 }
 0x4e4   : > { %4428 = vmatmul.mubr.msk.f32.gmra.mrb[76].mxu0 %vm831_vm4, %v2894_v34  ;;  %v4376_v44 = vpop.f32.mrb[46].mxu0  ;;  %v3269_v60 = vsel %vm831_vm4, %v5886_v46, %v5622_v18  ;;  %v3271_v18 = vsel %vm831_vm4, %v5894_v41, %v5634_v20  ;;  %v3274_v35 = vsel %vm831_vm4, %v5908_v25, %v5656_v62  ;;  %v3273_v20 = vsel %vm831_vm4, %v5902_v4, %v5646_v24 }
 0x4e5   : > { %v2830_v15 = vadd.f32 %v4376_v44, %v5979_v1  ;;  %v2824_v54 = vpop.f32.mrb[47].mxu0  ;;  %v3276_v62 = vsel %vm831_vm4, %v5916_v55, %v5668_v10 }
 0x4e6   : > { %v2825_v2 = vadd.f32 %v5979_v1, %v2824_v54 }
 0x4e7   : > { %v2864_v33 = vmul.f32 0.01, %v2830_v15 }
 0x4e8   : > { %v2863_v30 = vmul.f32 0.01, %v2825_v2 }
 0x4e9   : > { %v2896_v45 = vmax.f32 %v2830_v15, %v2864_v33 }
 0x4ea   : > { %v2895_v6 = vmax.f32 %v2825_v2, %v2863_v30 }
 0x4ec   : > { %4430 = vmatprep.mubr.msk.f32.mxu0 %vm831_vm4, %v2895_v6 }
 0x4ed   : > { %4431 = vmatmul.mubr.msk.f32.gmra.mrb[78].mxu0 %vm831_vm4, %v2896_v45 }
 0x57f   : > { %v4387_v50 = vpop.f32.mrb[48].mxu0 }
 0x580   : > { %v3074_v52 = vadd.f32 %v4387_v50, %v6049_v49  ;;  %v3068_v1 = vpop.f32.mrb[49].mxu0 }
 0x581   : > { %v3069_v17 = vadd.f32 %v6049_v49, %v3068_v1 }
 0x582   : > { %v3293_v63 = vsel %vm3291_vm5, %v3260_v23, %v3074_v52 }
 0x583   : > { %3325 = vst [vmem:[%s6060_s18 + $0x8] sm:$0xff] %v3293_v63  ;;  %v3292_v48 = vsel %vm3291_vm5, %v3259_v42, %v3069_v17  ;;  %v4390_v51 = vpop.f32.mrb[50].mxu0 }
 0x584   : > { %3324 = vst [vmem:[%s6060_s18] sm:$0xff] %v3292_v48  ;;  %v3084_v58 = vadd.f32 %v4390_v51, %v6049_v49  ;;  %v3078_v7 = vpop.f32.mrb[51].mxu0 }
 0x585   : > { %v3079_v36 = vadd.f32 %v6049_v49, %v3078_v7 }
 0x586   : > { %v3295_v34 = vsel %vm3291_vm5, %v3262_v14, %v3084_v58 }
 0x587   : > { %3327 = vst [vmem:[%s6060_s18 + $0x18] sm:$0xff] %v3295_v34  ;;  %v3294_v44 = vsel %vm3291_vm5, %v3261_v22, %v3079_v36  ;;  %v4393_v15 = vpop.f32.mrb[52].mxu0 }
 0x588   : > { %3326 = vst [vmem:[%s6060_s18 + $0x10] sm:$0xff] %v3294_v44  ;;  %v3094_v54 = vadd.f32 %v4393_v15, %v6049_v49  ;;  %v3088_v2 = vpop.f32.mrb[53].mxu0 }
 0x589   : > { %v3089_v61 = vadd.f32 %v6049_v49, %v3088_v2 }
 0x58a   : > { %v3297_v26 = vsel %vm3291_vm5, %v3264_v53, %v3094_v54 }
 0x58b   : > { %3329 = vst [vmem:[%s6060_s18 + $0x28] sm:$0xff] %v3297_v26  ;;  %v3296_v33 = vsel %vm3291_vm5, %v3263_v5, %v3089_v61  ;;  %v4396_v30 = vpop.f32.mrb[54].mxu0  ;;  %v6453_v61 = vld [vmem:[#allocation14_spill] sm:$0xff] }
 0x58c   : > { %3328 = vst [vmem:[%s6060_s18 + $0x20] sm:$0xff] %v3296_v33  ;;  %v3104_v6 = vadd.f32 %v4396_v30, %v6049_v49  ;;  %v3098_v45 = vpop.f32.mrb[55].mxu0  ;;  %v3275_v24 = vsel %vm831_vm4, %v5910_v0, %v6453_v61  ;;  %v6468_v61 = vld [vmem:[#allocation19_spill] sm:$0xff] }
 0x58d   : > { %v3099_v13 = vadd.f32 %v6049_v49, %v3098_v45  ;;  %v6455_v45 = vld [vmem:[#allocation15_spill] sm:$0xff] }
 0x58e   : > { %v3299_v57 = vsel %vm3291_vm5, %v3266_v38, %v3104_v6  ;;  %v6454_v6 = vld [vmem:[#allocation3_spill] sm:$0xff]  ;;  %v3277_v0 = vsel %vm831_vm4, %v5918_v27, %v6455_v45 }
 0x58f   : > { %3331 = vst [vmem:[%s6060_s18 + $0x38] sm:$0xff] %v3299_v57  ;;  %v3298_v50 = vsel %vm3291_vm5, %v3265_v47, %v3099_v13  ;;  %v4399_v52 = vpop.f32.mrb[56].mxu0  ;;  %v3278_v10 = vsel %vm831_vm4, %v5924_v16, %v6454_v6  ;;  %v6469_v6 = vld [vmem:[#allocation13_spill] sm:$0xff] }
 0x590   : > { %3330 = vst [vmem:[%s6060_s18 + $0x30] sm:$0xff] %v3298_v50  ;;  %v3114_v1 = vadd.f32 %v4399_v52, %v6049_v49  ;;  %v3108_v23 = vpop.f32.mrb[57].mxu0  ;;  %v6456_v52 = vld [vmem:[#allocation5_spill] sm:$0xff] }
 0x591   : > { %v3109_v43 = vadd.f32 %v6049_v49, %v3108_v23  ;;  %v3280_v16 = vsel %vm831_vm4, %v5932_v12, %v6456_v52  ;;  %v6457_v23 = vld [vmem:[#allocation16_spill] sm:$0xff] }
 0x592   : > { %v3301_v21 = vsel %vm3291_vm5, %v3268_v37, %v3114_v1  ;;  %v3279_v27 = vsel %vm831_vm4, %v5926_v19, %v6457_v23 }
 0x593   : > { %3333 = vst [vmem:[%s6060_s18 + $0x48] sm:$0xff] %v3301_v21  ;;  %v3300_v17 = vsel %vm3291_vm5, %v3267_v40, %v3109_v43  ;;  %v4402_v42 = vpop.f32.mrb[58].mxu0 }
 0x594   : > { %3332 = vst [vmem:[%s6060_s18 + $0x40] sm:$0xff] %v3300_v17  ;;  %v3124_v63 = vadd.f32 %v4402_v42, %v6049_v49  ;;  %v3118_v48 = vpop.f32.mrb[59].mxu0  ;;  %v6458_v42 = vld [vmem:[#allocation7_spill] sm:$0xff] }
 0x595   : > { %v3119_v32 = vadd.f32 %v6049_v49, %v3118_v48  ;;  %v3282_v12 = vsel %vm831_vm4, %v5940_v56, %v6458_v42  ;;  %v6459_v48 = vld [vmem:[#allocation4_spill] sm:$0xff]  ;;  %v3284_v56 = vsel %vm831_vm4, %v5948_v9, %v5716_v3  ;;  %v6462_v3 = vld [vmem:[#allocation18_spill] sm:$0xff] }
 0x596   : > { %v3303_v11 = vsel %vm3291_vm5, %v3270_v8, %v3124_v63  ;;  %v3281_v19 = vsel %vm831_vm4, %v5934_v31, %v6459_v48 }
 0x597   : > { %3335 = vst [vmem:[%s6060_s18 + $0x58] sm:$0xff] %v3303_v11  ;;  %v3302_v51 = vsel %vm3291_vm5, %v3269_v60, %v3119_v32  ;;  %v4405_v58 = vpop.f32.mrb[60].mxu0 }
 0x598   : > { %3334 = vst [vmem:[%s6060_s18 + $0x50] sm:$0xff] %v3302_v51  ;;  %v3134_v7 = vadd.f32 %v4405_v58, %v6049_v49  ;;  %v3128_v14 = vpop.f32.mrb[61].mxu0 }
 0x599   : > { %v3129_v39 = vadd.f32 %v6049_v49, %v3128_v14 }
 0x59a   : > { %v3305_v46 = vsel %vm3291_vm5, %v3272_v29, %v3134_v7  ;;  %v6460_v7 = vld [vmem:[#allocation6_spill] sm:$0xff] }
 0x59b   : > { %3337 = vst [vmem:[%s6060_s18 + $0x68] sm:$0xff] %v3305_v46  ;;  %v3304_v36 = vsel %vm3291_vm5, %v3271_v18, %v3129_v39  ;;  %v4408_v22 = vpop.f32.mrb[62].mxu0  ;;  %v3283_v31 = vsel %vm831_vm4, %v5942_v28, %v6460_v7  ;;  %v6464_v28 = vld [vmem:[#allocation17_spill] sm:$0xff] }
 0x59c   : > { %3336 = vst [vmem:[%s6060_s18 + $0x60] sm:$0xff] %v3304_v36  ;;  %v3144_v34 = vadd.f32 %v4408_v22, %v6049_v49  ;;  %v3138_v44 = vpop.f32.mrb[63].mxu0  ;;  %v6461_v36 = vld [vmem:[#allocation8_spill] sm:$0xff] }
 0x59d   : > { %v3139_v59 = vadd.f32 %v6049_v49, %v3138_v44  ;;  %v3286_v9 = vsel %vm831_vm4, %v6462_v3, %v6461_v36 }
 0x59e   : > { %v3307_v41 = vsel %vm3291_vm5, %v3274_v35, %v3144_v34  ;;  %v6463_v34 = vld [vmem:[#allocation9_spill] sm:$0xff] }
 0x59f   : > { %3339 = vst [vmem:[%s6060_s18 + $0x78] sm:$0xff] %v3307_v41  ;;  %v3306_v15 = vsel %vm3291_vm5, %v3273_v20, %v3139_v59  ;;  %v4411_v54 = vpop.f32.mrb[64].mxu0  ;;  %v3285_v44 = vsel %vm831_vm4, %v6464_v28, %v6463_v34 }
 0x5a0   : > { %3338 = vst [vmem:[%s6060_s18 + $0x70] sm:$0xff] %v3306_v15  ;;  %v3154_v2 = vadd.f32 %v4411_v54, %v6049_v49  ;;  %v3148_v53 = vpop.f32.mrb[65].mxu0  ;;  %v6465_v54 = vld [vmem:[#allocation10_spill] sm:$0xff] }
 0x5a1   : > { %v3149_v25 = vadd.f32 %v6049_v49, %v3148_v53 }
 0x5a2   : > { %v3309_v4 = vsel %vm3291_vm5, %v3276_v62, %v3154_v2  ;;  %v6466_v2 = vld [vmem:[#allocation20_spill] sm:$0xff] }
 0x5a3   : > { %3341 = vst [vmem:[%s6060_s18 + $0x88] sm:$0xff] %v3309_v4  ;;  %v3308_v5 = vsel %vm3291_vm5, %v3275_v24, %v3149_v25  ;;  %v4414_v26 = vpop.f32.mrb[66].mxu0  ;;  %v3288_v53 = vsel %vm831_vm4, %v6466_v2, %v6465_v54  ;;  %v6467_v25 = vld [vmem:[#allocation11_spill] sm:$0xff] }
 0x5a4   : > { %3340 = vst [vmem:[%s6060_s18 + $0x80] sm:$0xff] %v3308_v5  ;;  %v3164_v33 = vadd.f32 %v4414_v26, %v6049_v49  ;;  %v3158_v30 = vpop.f32.mrb[67].mxu0  ;;  %v3287_v24 = vsel %vm831_vm4, %v6468_v61, %v6467_v25 }
 0x5a5   : > { %v3159_v55 = vadd.f32 %v6049_v49, %v3158_v30 }
 0x5a6   : > { %v3311_v38 = vsel %vm3291_vm5, %v3278_v10, %v3164_v33  ;;  %v6470_v10 = vld [vmem:[#allocation22_spill] sm:$0xff] }
 0x5a7   : > { %3343 = vst [vmem:[%s6060_s18 + $0x98] sm:$0xff] %v3311_v38  ;;  %v3310_v13 = vsel %vm3291_vm5, %v3277_v0, %v3159_v55  ;;  %v4417_v47 = vpop.f32.mrb[68].mxu0  ;;  %v3290_v55 = vsel %vm831_vm4, %v6470_v10, %v6469_v6  ;;  %v6471_v0 = vld [vmem:[#allocation12_spill] sm:$0xff]  ;;  %v6472_v38 = vld [vmem:[#allocation21_spill] sm:$0xff] }
 0x5a8   : > { %3342 = vst [vmem:[%s6060_s18 + $0x90] sm:$0xff] %v3310_v13  ;;  %v3174_v57 = vadd.f32 %v4417_v47, %v6049_v49  ;;  %v3168_v50 = vpop.f32.mrb[69].mxu0  ;;  %v3289_v13 = vsel %vm831_vm4, %v6472_v38, %v6471_v0 }
 0x5a9   : > { %v3169_v1 = vadd.f32 %v6049_v49, %v3168_v50 }
 0x5aa   : > { %v3313_v37 = vsel %vm3291_vm5, %v3280_v16, %v3174_v57 }
 0x5ab   : > { %3345 = vst [vmem:[%s6060_s18 + $0xa8] sm:$0xff] %v3313_v37  ;;  %v3312_v43 = vsel %vm3291_vm5, %v3279_v27, %v3169_v1  ;;  %v4420_v40 = vpop.f32.mrb[70].mxu0 }
 0x5ac   : > { %3344 = vst [vmem:[%s6060_s18 + $0xa0] sm:$0xff] %v3312_v43  ;;  %v3184_v21 = vadd.f32 %v4420_v40, %v6049_v49  ;;  %v3178_v17 = vpop.f32.mrb[71].mxu0 }
 0x5ad   : > { %v3179_v63 = vadd.f32 %v6049_v49, %v3178_v17 }
 0x5ae   : > { %v3315_v8 = vsel %vm3291_vm5, %v3282_v12, %v3184_v21 }
 0x5af   : > { %3347 = vst [vmem:[%s6060_s18 + $0xb8] sm:$0xff] %v3315_v8  ;;  %v3314_v32 = vsel %vm3291_vm5, %v3281_v19, %v3179_v63  ;;  %v4423_v60 = vpop.f32.mrb[72].mxu0 }
 0x5b0   : > { %3346 = vst [vmem:[%s6060_s18 + $0xb0] sm:$0xff] %v3314_v32  ;;  %v3194_v11 = vadd.f32 %v4423_v60, %v6049_v49  ;;  %v3188_v51 = vpop.f32.mrb[73].mxu0 }
 0x5b1   : > { %v3189_v58 = vadd.f32 %v6049_v49, %v3188_v51 }
 0x5b2   : > { %v3317_v14 = vsel %vm3291_vm5, %v3284_v56, %v3194_v11 }
 0x5b3   : > { %3349 = vst [vmem:[%s6060_s18 + $0xc8] sm:$0xff] %v3317_v14  ;;  %v3316_v29 = vsel %vm3291_vm5, %v3283_v31, %v3189_v58  ;;  %v4426_v39 = vpop.f32.mrb[74].mxu0 }
 0x5b4   : > { %3348 = vst [vmem:[%s6060_s18 + $0xc0] sm:$0xff] %v3316_v29  ;;  %v3204_v18 = vadd.f32 %v4426_v39, %v6049_v49  ;;  %v3198_v46 = vpop.f32.mrb[75].mxu0 }
 0x5b5   : > { %v3199_v22 = vadd.f32 %v6049_v49, %v3198_v46 }
 0x5b6   : > { %v3319_v35 = vsel %vm3291_vm5, %v3286_v9, %v3204_v18 }
 0x5b7   : > { %3351 = vst [vmem:[%s6060_s18 + $0xd8] sm:$0xff] %v3319_v35  ;;  %v3318_v59 = vsel %vm3291_vm5, %v3285_v44, %v3199_v22  ;;  %v4429_v20 = vpop.f32.mrb[76].mxu0 }
 0x5b8   : > { %3350 = vst [vmem:[%s6060_s18 + $0xd0] sm:$0xff] %v3318_v59  ;;  %v3214_v41 = vadd.f32 %v4429_v20, %v6049_v49  ;;  %v3208_v15 = vpop.f32.mrb[77].mxu0 }
 0x5b9   : > { %v3209_v62 = vadd.f32 %v6049_v49, %v3208_v15 }
 0x5ba   : > { %v3321_v4 = vsel %vm3291_vm5, %v3288_v53, %v3214_v41 }
 0x5bb   : > { %3353 = vst [vmem:[%s6060_s18 + $0xe8] sm:$0xff] %v3321_v4  ;;  %v3320_v5 = vsel %vm3291_vm5, %v3287_v24, %v3209_v62 }
 0x5bc   : > { %3352 = vst [vmem:[%s6060_s18 + $0xe0] sm:$0xff] %v3320_v5 }
 0x5bf   : > { %3362 = sbr.rel (!%p4934_p4) target bundleno = 1534 (0x5fe), region = 44 }
 0x5c0   : > { %v4432_v26 = vpop.f32.mrb[78].mxu0 }
 0x5c1   : > { %v3224_v33 = vadd.f32 %v4432_v26, %v6049_v49  ;;  %v3218_v30 = vpop.f32.mrb[79].mxu0 }
 0x5c2   : > { %v3219_v45 = vadd.f32 %v6049_v49, %v3218_v30 }
 0x5c3   : > { %v3323_v47 = vsel %vm3291_vm5, %v3290_v55, %v3224_v33 }
 0x5c4   : > { %3355 = vst [vmem:[%s6060_s18 + $0xf8] sm:$0xff] %v3323_v47  ;;  %v3322_v57 = vsel %vm3291_vm5, %v3289_v13, %v3219_v45 }
 0x5c5   : > { %3354 = vst [vmem:[%s6060_s18 + $0xf0] sm:$0xff] %v3322_v57 }
 0x5c6   : > { %s6482_s8 = smov (!%p3365_p8, %s3364_s8), 32 }
 0x5c7   : > { %s3961_s14 = sshll.u32 %s6482_s8, 7 }
 0x5c8   : > { %p3964_p9 = scmp.eq.s32.totalorder %s3961_s14, 0 }
 0x5c9   : > { %s6258_s15 = sshrl.u32 (!%p3964_p9), %s6482_s8, 5 }
 0x5ca   : > { %3373 = sbr.rel (%p3964_p9) target bundleno = 1534 (0x5fe), region = 48  ;;  %p3965_p10 = scmp.le.s32.totalorder (!%p3964_p9), %s6258_s15, 0 }
 0x5d1   : > { %3663 = sbr.rel (%p3965_p10) target bundleno = 1513 (0x5e9), region = 130  ;;  %s6473_s21 = smov (!%p3965_p10), %s6252_s13 }
 0x5d2   : > { %s6474_s26 = smov (!%p3965_p10), %s6060_s18  ;;  %s6267_s6 = smov (!%p3965_p10), 0  }
 0x5d3   : > { %s6269_s16 = smov (!%p3965_p10), 0  }
 0x5d8 LB: >> { %v3497_v49 = vld [vmem:[%s4850_s26] sm:$0xff]  ;;  %v3499_v50 = vld [vmem:[%s4850_s26 + $0x8] sm:$0xff]  ;;  %v3501_v52 = vld [vmem:[%s4850_s26 + $0x10] sm:$0xff]  ;;  %s3561_s12 = sadd.s32 1, %s4854_s6  ;;  %s3491_s16 = sadd.s32 1, %s4858_s16   ;;  %s4858_s16 = sphi %s6269_s16, %s3491_s16   ;;  %s4854_s6 = sphi %s6267_s6, %s6477_s6   ;;  %s4850_s26 = sphi %s6474_s26, %s6476_s26   ;;  %s4846_s21 = sphi %s6473_s21, %s6475_s21  }
 0x5d9   : >> { %3498 = vst [vmem:[%s4846_s21] sm:$0xff] %v3497_v49  ;;  %3500 = vst [vmem:[%s4846_s21 + $0x8] sm:$0xff] %v3499_v50  ;;  %v3503_v16 = vld [vmem:[%s4850_s26 + $0x18] sm:$0xff]  ;;  %v3505_v1 = vld [vmem:[%s4850_s26 + $0x20] sm:$0xff]  ;;  %p3562_p11 = scmp.ge.s32.totalorder %s3561_s12, %s6258_s15  ;;  %p3490_p12 = scmp.ge.s32.totalorder %s3491_s16, %s6258_s15 }
 0x5da   : >> { %3502 = vst [vmem:[%s4846_s21 + $0x10] sm:$0xff] %v3501_v52  ;;  %v3507_v23 = vld [vmem:[%s4850_s26 + $0x28] sm:$0xff]  ;;  %3504 = vst [vmem:[%s4846_s21 + $0x18] sm:$0xff] %v3503_v16  ;;  %v3509_v27 = vld [vmem:[%s4850_s26 + $0x30] sm:$0xff] }
 0x5db   : >> { %3506 = vst [vmem:[%s4846_s21 + $0x20] sm:$0xff] %v3505_v1  ;;  %3508 = vst [vmem:[%s4846_s21 + $0x28] sm:$0xff] %v3507_v23  ;;  %v3511_v37 = vld [vmem:[%s4850_s26 + $0x38] sm:$0xff]  ;;  %v3513_v43 = vld [vmem:[%s4850_s26 + $0x40] sm:$0xff]  ;;  %s6484_s12 = smov (%p3562_p11, %s3561_s12), 0 }
 0x5dc   : >> { %3510 = vst [vmem:[%s4846_s21 + $0x30] sm:$0xff] %v3509_v27  ;;  %3512 = vst [vmem:[%s4846_s21 + $0x38] sm:$0xff] %v3511_v37  ;;  %v3515_v40 = vld [vmem:[%s4850_s26 + $0x48] sm:$0xff]  ;;  %v3517_v21 = vld [vmem:[%s4850_s26 + $0x50] sm:$0xff]  ;;  %s3966_s20 = sshll.u32 %s6484_s12, 8  ;;  %s6477_s6 = smov %s6484_s12 }
 0x5dd   : >> { %3514 = vst [vmem:[%s4846_s21 + $0x40] sm:$0xff] %v3513_v43  ;;  %v3519_v17 = vld [vmem:[%s4850_s26 + $0x58] sm:$0xff]  ;;  %3516 = vst [vmem:[%s4846_s21 + $0x48] sm:$0xff] %v3515_v40  ;;  %v3521_v42 = vld [vmem:[%s4850_s26 + $0x60] sm:$0xff]  ;;  %s6325_s23 = scalar_lea.vmem %s6060_s18, %s3966_s20 [#allocation2]   ;;  %s3567_s24 = scalar_lea.vmem %s6252_s13, %s3966_s20  }
 0x5de   : >> { %3518 = vst [vmem:[%s4846_s21 + $0x50] sm:$0xff] %v3517_v21  ;;  %3520 = vst [vmem:[%s4846_s21 + $0x58] sm:$0xff] %v3519_v17  ;;  %v3523_v12 = vld [vmem:[%s4850_s26 + $0x68] sm:$0xff]  ;;  %v3525_v63 = vld [vmem:[%s4850_s26 + $0x70] sm:$0xff] }
 0x5df   : >> { %3522 = vst [vmem:[%s4846_s21 + $0x60] sm:$0xff] %v3521_v42  ;;  %3524 = vst [vmem:[%s4846_s21 + $0x68] sm:$0xff] %v3523_v12  ;;  %v3527_v48 = vld [vmem:[%s4850_s26 + $0x78] sm:$0xff]  ;;  %v3529_v19 = vld [vmem:[%s4850_s26 + $0x80] sm:$0xff] }
 0x5e0   : >> { %3526 = vst [vmem:[%s4846_s21 + $0x70] sm:$0xff] %v3525_v63  ;;  %v3531_v8 = vld [vmem:[%s4850_s26 + $0x88] sm:$0xff]  ;;  %3528 = vst [vmem:[%s4846_s21 + $0x78] sm:$0xff] %v3527_v48  ;;  %v3533_v32 = vld [vmem:[%s4850_s26 + $0x90] sm:$0xff] }
 0x5e1   : >> { %3530 = vst [vmem:[%s4846_s21 + $0x80] sm:$0xff] %v3529_v19  ;;  %3532 = vst [vmem:[%s4846_s21 + $0x88] sm:$0xff] %v3531_v8  ;;  %v3535_v60 = vld [vmem:[%s4850_s26 + $0x98] sm:$0xff]  ;;  %v3537_v11 = vld [vmem:[%s4850_s26 + $0xa0] sm:$0xff] }
 0x5e2   : >> { %3534 = vst [vmem:[%s4846_s21 + $0x90] sm:$0xff] %v3533_v32  ;;  %3536 = vst [vmem:[%s4846_s21 + $0x98] sm:$0xff] %v3535_v60  ;;  %v3539_v51 = vld [vmem:[%s4850_s26 + $0xa8] sm:$0xff]  ;;  %v3541_v56 = vld [vmem:[%s4850_s26 + $0xb0] sm:$0xff]  ;;  %3493 = sbr.rel (!%p3490_p12) target bundleno = 1496 (0x5d8), region = 136 }
 0x5e3   : >> { %3538 = vst [vmem:[%s4846_s21 + $0xa0] sm:$0xff] %v3537_v11  ;;  %v3543_v58 = vld [vmem:[%s4850_s26 + $0xb8] sm:$0xff]  ;;  %3540 = vst [vmem:[%s4846_s21 + $0xa8] sm:$0xff] %v3539_v51  ;;  %v3545_v7 = vld [vmem:[%s4850_s26 + $0xc0] sm:$0xff] }
 0x5e4   : >> { %3542 = vst [vmem:[%s4846_s21 + $0xb0] sm:$0xff] %v3541_v56  ;;  %3544 = vst [vmem:[%s4846_s21 + $0xb8] sm:$0xff] %v3543_v58  ;;  %v3547_v31 = vld [vmem:[%s4850_s26 + $0xc8] sm:$0xff]  ;;  %v3549_v14 = vld [vmem:[%s4850_s26 + $0xd0] sm:$0xff] }
 0x5e5   : >> { %3546 = vst [vmem:[%s4846_s21 + $0xc0] sm:$0xff] %v3545_v7  ;;  %3548 = vst [vmem:[%s4846_s21 + $0xc8] sm:$0xff] %v3547_v31  ;;  %v3551_v29 = vld [vmem:[%s4850_s26 + $0xd8] sm:$0xff]  ;;  %v3553_v39 = vld [vmem:[%s4850_s26 + $0xe0] sm:$0xff] }
 0x5e6   : >> { %3550 = vst [vmem:[%s4846_s21 + $0xd0] sm:$0xff] %v3549_v14  ;;  %v3555_v18 = vld [vmem:[%s4850_s26 + $0xe8] sm:$0xff]  ;;  %3552 = vst [vmem:[%s4846_s21 + $0xd8] sm:$0xff] %v3551_v29  ;;  %v3557_v46 = vld [vmem:[%s4850_s26 + $0xf0] sm:$0xff] }
 0x5e7   : >> { %3554 = vst [vmem:[%s4846_s21 + $0xe0] sm:$0xff] %v3553_v39  ;;  %3556 = vst [vmem:[%s4846_s21 + $0xe8] sm:$0xff] %v3555_v18  ;;  %v3559_v36 = vld [vmem:[%s4850_s26 + $0xf8] sm:$0xff]  ;;  %s6476_s26 = smov %s6325_s23 }
 0x5e8   : >> { %3558 = vst [vmem:[%s4846_s21 + $0xf0] sm:$0xff] %v3557_v46  ;;  %3560 = vst [vmem:[%s4846_s21 + $0xf8] sm:$0xff] %v3559_v36  ;;  %s6475_s21 = smov %s3567_s24 }
 0x5e9 PF: > { %s6366_s17 = sand.u32 31, %s6482_s8   ;;  %s3977_s27 = sshll.u32 %s6258_s15, 8 }
 0x5ea   : > { %s3572_s28 = scalar_lea.vmem %s6060_s18, %s3977_s27 [#allocation2]   ;;  %s3574_s29 = scalar_lea.vmem %s6252_s13, %s3977_s27  }
 0x5eb   : > { %p3971_p13 = scmp.le.s32.totalorder %s6366_s17, 0 }
 0x5ec   : > { %s4860_s30 = smov (!%p3971_p13), %s3574_s29   ;;  %s4864_s7 = smov (!%p3971_p13), %s3572_s28  }
 0x5ed   : > { %3677 = sbr.rel (%p3971_p13) target bundleno = 1534 (0x5fe), region = 141  ;;  %s4868_s9 = smov (!%p3971_p13), 0  }
 0x5ee   : > { %s4872_s10 = smov (!%p3971_p13), 0  }
 0x5f4 LB: >> { %v3584_v3 = vld [vmem:[%s4866_s7] sm:$0xff]  ;;  %s3586_s8 = sadd.s32 1, %s4870_s9  ;;  %s3578_s10 = sadd.s32 1, %s4874_s10   ;;  %s4874_s10 = sphi %s4872_s10, %s3578_s10   ;;  %s4870_s9 = sphi %s4868_s9, %s4869_s9   ;;  %s4866_s7 = sphi %s4864_s7, %s3591_s7   ;;  %s4862_s30 = sphi %s4860_s30, %s3592_s30  }
 0x5f5   : >> { %3585 = vst [vmem:[%s4862_s30] sm:$0xff] %v3584_v3  ;;  %p3587_p0 = scmp.ge.s32.totalorder %s3586_s8, %s6366_s17  ;;  %p3577_p1 = scmp.ge.s32.totalorder %s3578_s10, %s6366_s17 }
 0x5f7   : >> { %s6486_s8 = smov (%p3587_p0, %s3586_s8), 0  ;;  %3580 = sbr.rel (!%p3577_p1) target bundleno = 1524 (0x5f4), region = 147 }
 0x5f8   : >> { %s3972_s18 = sshll.u32 %s6486_s8, 3  ;;  %s4869_s9 = smov %s6486_s8  }
 0x5f9   : >> { %s3591_s7 = scalar_lea.vmem %s3572_s28, %s3972_s18 [#allocation2]   ;;  %s3592_s30 = scalar_lea.vmem %s3574_s29, %s3972_s18  }
 0x5fe PF: > { %p12_p2 = scmp.ge.s32.totalorder %s4924_s22, 6   ;;  %s6478_s18 = smov %s4838_s19 }
 0x5ff   : > { %s6479_s19 = smov %s4932_s25  ;;  %s6480_s20 = smov %s4924_s22 }
 0x600   :  { %14 = sbr.rel (!%p12_p2) target bundleno = 2 (0x2), region = 158 }

</bundles_post_ra>
